<compile_context>
chip_gen: v7x
topology: tpu7x:2x2x1
jax: 0.10.0
libtpu: 0.0.40
codegen_flags: <defaults>
</compile_context>

<pallas_src>
import jax
import jax.numpy as jnp
from jax.experimental import pallas as pl
from jax.experimental.pallas import tpu as pltpu

# ---- synthetic base-model config (small GPT-2-style causal LM) ----
VOCAB = 128
D = 32
N_HEAD = 2
D_HEAD = D // N_HEAD
N_LAYER = 2
FFN = 4 * D
MAX_POS = 32
LN_EPS = 1e-5


# ------------------------------ fused kernel -------------------------------
def _fused_forward_kernel(
    x_emb_ref, bias_ref, wte_ref, lnf_ref, lnvec_ref,
    w_q_ref, w_k_ref, w_v_ref, b_qkv_ref, w_o_ref,
    w_fc_ref, b_fc_ref, w_proj_ref,
    logits_ref,
):
    bf16 = jnp.bfloat16
    BB, S, Dm = x_emb_ref.shape
    R = BB * S

    def ln(v, g, b):
        mu = jnp.mean(v, axis=-1, keepdims=True)
        var = jnp.mean(jnp.square(v - mu), axis=-1, keepdims=True)
        return (v - mu) * jax.lax.rsqrt(var + LN_EPS) * g + b

    x = x_emb_ref[...].reshape(R, Dm)       # (R, D) f32 residual stream (in regs/VMEM)
    attn_bias = bias_ref[...]               # (R, R) block-diag causal additive bias
    scale = 1.0 / (D_HEAD ** 0.5)

    bmm = (((2,), (1,)), ((0,), (0,)))      # 'hrc,hcd->hrd' (head-batched matmul)
    qkt = (((2,), (2,)), ((0,), (0,)))      # 'hrd,hkd->hrk'

    for l in range(N_LAYER):                # static unroll: whole model in one grid step
        lnv = lnvec_ref[l]                  # (6, D): ln1_g, ln1_b, ln2_g, ln2_b, b_o, b_proj
        bqkv = b_qkv_ref[l]                 # (3H, 1, Dh): q-bias rows, k-bias rows, v-bias rows

        # ------------------------------ attention ---------------------------
        h = ln(x, lnv[0:1, :], lnv[1:2, :])
        hb = jnp.broadcast_to(h.astype(bf16)[None], (N_HEAD, R, Dm))
        q = jax.lax.dot_general(hb, w_q_ref[l], bmm,
                                preferred_element_type=jnp.float32)
        q = (q + bqkv[0:N_HEAD]).astype(bf16)
        k = jax.lax.dot_general(hb, w_k_ref[l], bmm,
                                preferred_element_type=jnp.float32)
        k = (k + bqkv[N_HEAD:2 * N_HEAD]).astype(bf16)
        v = jax.lax.dot_general(hb, w_v_ref[l], bmm,
                                preferred_element_type=jnp.float32)
        v = (v + bqkv[2 * N_HEAD:3 * N_HEAD]).astype(bf16)

        s = jax.lax.dot_general(q, k, qkt,
                                preferred_element_type=jnp.float32) * scale + attn_bias
        m = jnp.max(s, axis=-1, keepdims=True)
        p = jnp.exp(s - m)
        denom = jnp.sum(p, axis=-1, keepdims=True)
        p = p * pl.reciprocal(denom, approx=True)       # EUP slot; keeps VALU free
        o = jax.lax.dot_general(p.astype(bf16), v, bmm,
                                preferred_element_type=jnp.float32)     # (H, R, Dh)
        attn = jax.lax.dot_general(o.astype(bf16), w_o_ref[l], bmm,
                                   preferred_element_type=jnp.float32)  # (H, R, D)
        x = x + jnp.sum(attn, axis=0) + lnv[4:5, :]

        # --------------------------------- MLP ------------------------------
        h2 = ln(x, lnv[2:3, :], lnv[3:4, :])
        h2 = jax.nn.gelu(jnp.dot(h2.astype(bf16), w_fc_ref[l],
                                 preferred_element_type=jnp.float32) + b_fc_ref[l])
        x = x + jnp.dot(h2.astype(bf16), w_proj_ref[l],
                        preferred_element_type=jnp.float32) + lnv[5:6, :]

    # --------- final layernorm + tied LM head (lane-dense 128 store) --------
    hf = ln(x, lnf_ref[0:1, :], lnf_ref[1:2, :])
    logits = jax.lax.dot_general(hf.astype(bf16), wte_ref[...],
                                 (((1,), (1,)), ((), ())),
                                 preferred_element_type=jnp.float32)    # (R, VOCAB)
    logits_ref[...] = logits.reshape(BB, S, VOCAB)


# ------------------------------ model forward ------------------------------
@jax.jit
def implicit_model_forward(params, input_ids):
    """ImplicitModel.forward(input_ids) -> logits [B, S, VOCAB] (float32)."""
    B, S = input_ids.shape
    L, H, Dh = N_LAYER, N_HEAD, D_HEAD
    # 2-way "parallel" batch split keeps both v7x TensorCores busy; on 1-TC
    # chips it is just two cheap steps over the VMEM-resident weights.
    NB = 2 if (B >= 2 and B % 2 == 0) else 1
    BB = B // NB
    R = BB * S
    bf16 = jnp.bfloat16

    # Token + position embedding: plain gather, glue outside Pallas.
    x_emb = params["wte"][input_ids] + params["wpe"][:S][None]          # (B, S, D) f32

    # ---- pre-arranged, head-split weights (DMA'd once, VMEM-resident) ------
    w_qkv = params["w_qkv"]                                             # (L, D, 3D)

    def head_split(w):                                                  # (L, D, D) -> (L, H, D, Dh)
        return w.reshape(L, D, H, Dh).transpose(0, 2, 1, 3).astype(bf16)

    w_q = head_split(w_qkv[:, :, 0 * D:1 * D])
    w_k = head_split(w_qkv[:, :, 1 * D:2 * D])
    w_v = head_split(w_qkv[:, :, 2 * D:3 * D])
    b_qkv_h = params["b_qkv"].reshape(L, 3, H, Dh).reshape(L, 3 * H, 1, Dh)
    w_o_h = params["w_o"].reshape(L, H, Dh, D).astype(bf16)
    w_fc = params["w_fc"].astype(bf16)
    b_fc = params["b_fc"].reshape(L, 1, FFN)
    w_proj = params["w_proj"].astype(bf16)
    wte_lm = params["wte"].astype(bf16)

    # Small per-layer vectors consolidated into one slab (one buffer, one DMA).
    lnvec = jnp.stack([params["ln1_g"], params["ln1_b"],
                       params["ln2_g"], params["ln2_b"],
                       params["b_o"], params["b_proj"]], axis=1)        # (L, 6, D)
    lnf = jnp.stack([params["lnf_g"], params["lnf_b"]], axis=0)         # (2, D)

    # Block-diagonal causal additive bias, hoisted out of the kernel.
    ridx = jnp.arange(R)
    qi, ki = ridx[:, None], ridx[None, :]
    attn_bias = jnp.where(((qi // S) == (ki // S)) & (qi >= ki),
                          0.0, -1e30).astype(jnp.float32)               # (R, R)

    def const_spec(a):  # full-array block, constant index -> fetched once
        zeros = (0,) * a.ndim
        return pl.BlockSpec(a.shape, lambda g, _z=zeros: _z)

    in_specs = [
        pl.BlockSpec((BB, S, D), lambda g: (g, 0, 0)),                  # x_emb
        const_spec(attn_bias), const_spec(wte_lm), const_spec(lnf),
        const_spec(lnvec),
        const_spec(w_q), const_spec(w_k), const_spec(w_v), const_spec(b_qkv_h),
        const_spec(w_o_h), const_spec(w_fc), const_spec(b_fc), const_spec(w_proj),
    ]
    out_spec = pl.BlockSpec((BB, S, VOCAB), lambda g: (g, 0, 0))

    logits = pl.pallas_call(
        _fused_forward_kernel,
        grid=(NB,),
        in_specs=in_specs,
        out_specs=out_spec,
        out_shape=jax.ShapeDtypeStruct((B, S, VOCAB), jnp.float32),
        compiler_params=pltpu.CompilerParams(
            dimension_semantics=("parallel",)),
    )(x_emb, attn_bias, wte_lm, lnf, lnvec,
      w_q, w_k, w_v, b_qkv_h, w_o_h, w_fc, b_fc, w_proj)
    return logits


# ------------------------- deterministic parameters ------------------------
def init_params(key):
    def normal(k, shape, scale=0.02):
        return (scale * jax.random.normal(k, shape)).astype(jnp.float32)

    keys = iter(jax.random.split(key, 8))
    L = N_LAYER
    return {
        "wte": normal(next(keys), (VOCAB, D)),
        "wpe": normal(next(keys), (MAX_POS, D)),
        "lnf_g": jnp.ones((D,), jnp.float32),
        "lnf_b": jnp.zeros((D,), jnp.float32),
        "ln1_g": jnp.ones((L, D), jnp.float32),
        "ln1_b": jnp.zeros((L, D), jnp.float32),
        "w_qkv": normal(next(keys), (L, D, 3 * D)),
        "b_qkv": jnp.zeros((L, 3 * D), jnp.float32),
        "w_o": normal(next(keys), (L, D, D)),
        "b_o": jnp.zeros((L, D), jnp.float32),
        "ln2_g": jnp.ones((L, D), jnp.float32),
        "ln2_b": jnp.zeros((L, D), jnp.float32),
        "w_fc": normal(next(keys), (L, D, FFN)),
        "b_fc": jnp.zeros((L, FFN), jnp.float32),
        "w_proj": normal(next(keys), (L, FFN, D)),
        "b_proj": jnp.zeros((L, D), jnp.float32),
    }


# ------------------------ pure-JAX reference (check) ------------------------
def reference_forward(params, input_ids):
    B, S = input_ids.shape

    def ln(x, g, b):
        mu = jnp.mean(x, -1, keepdims=True)
        var = jnp.mean(jnp.square(x - mu), -1, keepdims=True)
        return (x - mu) * jax.lax.rsqrt(var + LN_EPS) * g + b

    x = params["wte"][input_ids] + params["wpe"][:S][None]  # (B, S, D)
    for l in range(N_LAYER):
        h = ln(x, params["ln1_g"][l], params["ln1_b"][l])
        qkv = h @ params["w_qkv"][l] + params["b_qkv"][l]
        q, k, v = jnp.split(qkv, 3, axis=-1)

        def heads(t):
            return t.reshape(B, S, N_HEAD, D_HEAD).transpose(0, 2, 1, 3)

        q, k, v = heads(q), heads(k), heads(v)
        s = jnp.einsum("bhqd,bhkd->bhqk", q, k) / (D_HEAD ** 0.5)
        mask = jnp.tril(jnp.ones((S, S), bool))
        s = jnp.where(mask, s, -1e30)
        p = jax.nn.softmax(s, axis=-1)
        o = jnp.einsum("bhqk,bhkd->bhqd", p, v).transpose(0, 2, 1, 3).reshape(B, S, D)
        x = x + o @ params["w_o"][l] + params["b_o"][l]
        h = ln(x, params["ln2_g"][l], params["ln2_b"][l])
        mlp = jax.nn.gelu(h @ params["w_fc"][l] + params["b_fc"][l]) @ params["w_proj"][l]
        x = x + mlp + params["b_proj"][l]
    x = ln(x, params["lnf_g"], params["lnf_b"])
    return x @ params["wte"].T


# TODO(synk): compute_loss / generate rely on a real tokenizer (eos positions),
# HF GenerationConfig and checkpoint loading; only the forward pass (logits) is
# implemented here.

if __name__ == "__main__":
    key = jax.random.PRNGKey(0)
    pkey, ikey = jax.random.split(key)
    params = init_params(pkey)

    B, S = 2, 8
    input_ids = jax.random.randint(ikey, (B, S), 0, VOCAB, dtype=jnp.int32)

    logits = jax.block_until_ready(implicit_model_forward(params, input_ids))

    assert logits.shape == (B, S, VOCAB)
    assert bool(jnp.all(jnp.isfinite(logits)))

    ref = jax.block_until_ready(reference_forward(params, input_ids))
    assert bool(jnp.allclose(logits, ref, atol=2e-2, rtol=2e-2)), "mismatch vs reference"

    print("KERNEL_OK")
</pallas_src>

<mosaic_0001>
module attributes {stable_mosaic.version = 11 : i64} {
  func.func @_fused_forward_kernel(%arg0: i32, %arg1: memref<1x8x32xf32, #tpu.memory_space<vmem>>, %arg2: memref<8x8xf32, #tpu.memory_space<vmem>>, %arg3: memref<128x32xbf16, #tpu.memory_space<vmem>>, %arg4: memref<2x32xf32, #tpu.memory_space<vmem>>, %arg5: memref<2x6x32xf32, #tpu.memory_space<vmem>>, %arg6: memref<2x2x32x16xbf16, #tpu.memory_space<vmem>>, %arg7: memref<2x2x32x16xbf16, #tpu.memory_space<vmem>>, %arg8: memref<2x2x32x16xbf16, #tpu.memory_space<vmem>>, %arg9: memref<2x6x1x16xf32, #tpu.memory_space<vmem>>, %arg10: memref<2x2x16x32xbf16, #tpu.memory_space<vmem>>, %arg11: memref<2x32x128xbf16, #tpu.memory_space<vmem>>, %arg12: memref<2x1x128xf32, #tpu.memory_space<vmem>>, %arg13: memref<2x128x32xbf16, #tpu.memory_space<vmem>>, %arg14: memref<1x8x128xf32, #tpu.memory_space<vmem>>) attributes {dimension_semantics = [#tpu.dimension_semantics<parallel>], iteration_bounds = array<i64: 2>, scalar_prefetch = 0 : i64, scratch_operands = 0 : i64, tpu.core_type = #tpu.core_type<tc>, window_params = [{transform_indices = @transform_0, window_bounds = array<i64: 1, 8, 32>}, {pipeline_mode = #tpu.pipeline_mode<synchronous>, transform_indices = @transform_1, window_bounds = array<i64: 8, 8>}, {pipeline_mode = #tpu.pipeline_mode<synchronous>, transform_indices = @transform_2, window_bounds = array<i64: 128, 32>}, {pipeline_mode = #tpu.pipeline_mode<synchronous>, transform_indices = @transform_3, window_bounds = array<i64: 2, 32>}, {pipeline_mode = #tpu.pipeline_mode<synchronous>, transform_indices = @transform_4, window_bounds = array<i64: 2, 6, 32>}, {pipeline_mode = #tpu.pipeline_mode<synchronous>, transform_indices = @transform_5, window_bounds = array<i64: 2, 2, 32, 16>}, {pipeline_mode = #tpu.pipeline_mode<synchronous>, transform_indices = @transform_6, window_bounds = array<i64: 2, 2, 32, 16>}, {pipeline_mode = #tpu.pipeline_mode<synchronous>, transform_indices = @transform_7, window_bounds = array<i64: 2, 2, 32, 16>}, {pipeline_mode = #tpu.pipeline_mode<synchronous>, transform_indices = @transform_8, window_bounds = array<i64: 2, 6, 1, 16>}, {pipeline_mode = #tpu.pipeline_mode<synchronous>, transform_indices = @transform_9, window_bounds = array<i64: 2, 2, 16, 32>}, {pipeline_mode = #tpu.pipeline_mode<synchronous>, transform_indices = @transform_10, window_bounds = array<i64: 2, 32, 128>}, {pipeline_mode = #tpu.pipeline_mode<synchronous>, transform_indices = @transform_11, window_bounds = array<i64: 2, 1, 128>}, {pipeline_mode = #tpu.pipeline_mode<synchronous>, transform_indices = @transform_12, window_bounds = array<i64: 2, 128, 32>}, {transform_indices = @transform_13, window_bounds = array<i64: 1, 8, 128>}]} {
    %c0 = arith.constant 0 : index
    %c0_0 = arith.constant 0 : index
    %c0_1 = arith.constant 0 : index
    %0 = vector.load %arg1[%c0, %c0_0, %c0_1] : memref<1x8x32xf32, #tpu.memory_space<vmem>>, vector<1x8x32xf32>
    %1 = vector.shape_cast %0 : vector<1x8x32xf32> to vector<8x32xf32>
    %c0_2 = arith.constant 0 : index
    %c0_3 = arith.constant 0 : index
    %2 = vector.load %arg2[%c0_2, %c0_3] : memref<8x8xf32, #tpu.memory_space<vmem>>, vector<8x8xf32>
    %c0_4 = arith.constant 0 : index
    %c0_5 = arith.constant 0 : index
    %c0_6 = arith.constant 0 : index
    %3 = vector.load %arg5[%c0_4, %c0_5, %c0_6] : memref<2x6x32xf32, #tpu.memory_space<vmem>>, vector<1x6x32xf32>
    %4 = vector.shape_cast %3 : vector<1x6x32xf32> to vector<6x32xf32>
    %c0_7 = arith.constant 0 : index
    %c0_8 = arith.constant 0 : index
    %c0_9 = arith.constant 0 : index
    %c0_10 = arith.constant 0 : index
    %5 = vector.load %arg9[%c0_7, %c0_8, %c0_9, %c0_10] : memref<2x6x1x16xf32, #tpu.memory_space<vmem>>, vector<1x6x1x16xf32>
    %6 = vector.shape_cast %5 : vector<1x6x1x16xf32> to vector<6x1x16xf32>
    %7 = vector.extract_strided_slice %4 {offsets = [0, 0], sizes = [1, 32], strides = [1, 1]} : vector<6x32xf32> to vector<1x32xf32>
    %8 = vector.extract_strided_slice %4 {offsets = [1, 0], sizes = [1, 32], strides = [1, 1]} : vector<6x32xf32> to vector<1x32xf32>
    %cst = arith.constant dense<0.000000e+00> : vector<8xf32>
    %9 = vector.multi_reduction <add>, %1, %cst [1] : vector<8x32xf32> to vector<8xf32>
    %10 = vector.shape_cast %9 : vector<8xf32> to vector<8x1xf32>
    %cst_11 = arith.constant 3.200000e+01 : f32
    %11 = vector.broadcast %cst_11 : f32 to vector<8x1xf32>
    %12 = arith.divf %10, %11 : vector<8x1xf32>
    %13 = vector.broadcast %12 : vector<8x1xf32> to vector<8x32xf32>
    %14 = arith.subf %1, %13 : vector<8x32xf32>
    %15 = arith.mulf %14, %14 : vector<8x32xf32>
    %cst_12 = arith.constant dense<0.000000e+00> : vector<8xf32>
    %16 = vector.multi_reduction <add>, %15, %cst_12 [1] : vector<8x32xf32> to vector<8xf32>
    %17 = vector.shape_cast %16 : vector<8xf32> to vector<8x1xf32>
    %cst_13 = arith.constant 3.200000e+01 : f32
    %18 = vector.broadcast %cst_13 : f32 to vector<8x1xf32>
    %19 = arith.divf %17, %18 : vector<8x1xf32>
    %20 = vector.broadcast %12 : vector<8x1xf32> to vector<8x32xf32>
    %21 = arith.subf %1, %20 : vector<8x32xf32>
    %cst_14 = arith.constant 9.99999974E-6 : f32
    %22 = vector.broadcast %cst_14 : f32 to vector<8x1xf32>
    %23 = arith.addf %19, %22 : vector<8x1xf32>
    %24 = math.rsqrt %23 : vector<8x1xf32>
    %25 = vector.broadcast %24 : vector<8x1xf32> to vector<8x32xf32>
    %26 = arith.mulf %21, %25 : vector<8x32xf32>
    %27 = vector.broadcast %7 : vector<1x32xf32> to vector<8x32xf32>
    %28 = arith.mulf %26, %27 : vector<8x32xf32>
    %29 = vector.broadcast %8 : vector<1x32xf32> to vector<8x32xf32>
    %30 = arith.addf %28, %29 : vector<8x32xf32>
    %31 = arith.truncf %30 : vector<8x32xf32> to vector<8x32xbf16>
    %32 = vector.shape_cast %31 : vector<8x32xbf16> to vector<1x8x32xbf16>
    %33 = vector.shape_cast %32 : vector<1x8x32xbf16> to vector<1x8x32xbf16>
    %34 = vector.broadcast %33 : vector<1x8x32xbf16> to vector<2x8x32xbf16>
    %c0_15 = arith.constant 0 : index
    %c0_16 = arith.constant 0 : index
    %c0_17 = arith.constant 0 : index
    %c0_18 = arith.constant 0 : index
    %35 = vector.load %arg6[%c0_15, %c0_16, %c0_17, %c0_18] : memref<2x2x32x16xbf16, #tpu.memory_space<vmem>>, vector<1x2x32x16xbf16>
    %36 = vector.shape_cast %35 : vector<1x2x32x16xbf16> to vector<2x32x16xbf16>
    %cst_19 = arith.constant dense<0.000000e+00> : vector<2x8x16xf32>
    %37 = tpu.matmul %34, %36, %cst_19 {dimension_numbers = #tpu.dot_dimension_numbers<[2], [1], [1], [2], [0, 0, 0, 1, 1, 2], [0], [0]>} : vector<2x8x32xbf16>, vector<2x32x16xbf16>, vector<2x8x16xf32> -> vector<2x8x16xf32>
    %38 = vector.extract_strided_slice %6 {offsets = [0, 0, 0], sizes = [2, 1, 16], strides = [1, 1, 1]} : vector<6x1x16xf32> to vector<2x1x16xf32>
    %39 = vector.broadcast %38 : vector<2x1x16xf32> to vector<2x8x16xf32>
    %40 = arith.addf %37, %39 : vector<2x8x16xf32>
    %41 = arith.truncf %40 : vector<2x8x16xf32> to vector<2x8x16xbf16>
    %c0_20 = arith.constant 0 : index
    %c0_21 = arith.constant 0 : index
    %c0_22 = arith.constant 0 : index
    %c0_23 = arith.constant 0 : index
    %42 = vector.load %arg7[%c0_20, %c0_21, %c0_22, %c0_23] : memref<2x2x32x16xbf16, #tpu.memory_space<vmem>>, vector<1x2x32x16xbf16>
    %43 = vector.shape_cast %42 : vector<1x2x32x16xbf16> to vector<2x32x16xbf16>
    %cst_24 = arith.constant dense<0.000000e+00> : vector<2x8x16xf32>
    %44 = tpu.matmul %34, %43, %cst_24 {dimension_numbers = #tpu.dot_dimension_numbers<[2], [1], [1], [2], [0, 0, 0, 1, 1, 2], [0], [0]>} : vector<2x8x32xbf16>, vector<2x32x16xbf16>, vector<2x8x16xf32> -> vector<2x8x16xf32>
    %45 = vector.extract_strided_slice %6 {offsets = [2, 0, 0], sizes = [2, 1, 16], strides = [1, 1, 1]} : vector<6x1x16xf32> to vector<2x1x16xf32>
    %46 = vector.broadcast %45 : vector<2x1x16xf32> to vector<2x8x16xf32>
    %47 = arith.addf %44, %46 : vector<2x8x16xf32>
    %48 = arith.truncf %47 : vector<2x8x16xf32> to vector<2x8x16xbf16>
    %c0_25 = arith.constant 0 : index
    %c0_26 = arith.constant 0 : index
    %c0_27 = arith.constant 0 : index
    %c0_28 = arith.constant 0 : index
    %49 = vector.load %arg8[%c0_25, %c0_26, %c0_27, %c0_28] : memref<2x2x32x16xbf16, #tpu.memory_space<vmem>>, vector<1x2x32x16xbf16>
    %50 = vector.shape_cast %49 : vector<1x2x32x16xbf16> to vector<2x32x16xbf16>
    %cst_29 = arith.constant dense<0.000000e+00> : vector<2x8x16xf32>
    %51 = tpu.matmul %34, %50, %cst_29 {dimension_numbers = #tpu.dot_dimension_numbers<[2], [1], [1], [2], [0, 0, 0, 1, 1, 2], [0], [0]>} : vector<2x8x32xbf16>, vector<2x32x16xbf16>, vector<2x8x16xf32> -> vector<2x8x16xf32>
    %52 = vector.extract_strided_slice %6 {offsets = [4, 0, 0], sizes = [2, 1, 16], strides = [1, 1, 1]} : vector<6x1x16xf32> to vector<2x1x16xf32>
    %53 = vector.broadcast %52 : vector<2x1x16xf32> to vector<2x8x16xf32>
    %54 = arith.addf %51, %53 : vector<2x8x16xf32>
    %55 = arith.truncf %54 : vector<2x8x16xf32> to vector<2x8x16xbf16>
    %cst_30 = arith.constant dense<0.000000e+00> : vector<2x8x8xf32>
    %56 = tpu.matmul %41, %48, %cst_30 {dimension_numbers = #tpu.dot_dimension_numbers<[2], [2], [1], [1], [0, 0, 0, 1, 1, 1], [0], [0]>} : vector<2x8x16xbf16>, vector<2x8x16xbf16>, vector<2x8x8xf32> -> vector<2x8x8xf32>
    %cst_31 = arith.constant 2.500000e-01 : f32
    %57 = vector.broadcast %cst_31 : f32 to vector<2x8x8xf32>
    %58 = arith.mulf %56, %57 : vector<2x8x8xf32>
    %59 = vector.shape_cast %2 : vector<8x8xf32> to vector<1x8x8xf32>
    %60 = vector.broadcast %59 : vector<1x8x8xf32> to vector<2x8x8xf32>
    %61 = arith.addf %58, %60 : vector<2x8x8xf32>
    %cst_32 = arith.constant dense<0xFF800000> : vector<2x8xf32>
    %62 = vector.multi_reduction <maximumf>, %61, %cst_32 [2] : vector<2x8x8xf32> to vector<2x8xf32>
    %63 = vector.shape_cast %62 : vector<2x8xf32> to vector<2x8x1xf32>
    %64 = vector.broadcast %63 : vector<2x8x1xf32> to vector<2x8x8xf32>
    %65 = arith.subf %61, %64 : vector<2x8x8xf32>
    %66 = math.exp %65 : vector<2x8x8xf32>
    %cst_33 = arith.constant dense<0.000000e+00> : vector<2x8xf32>
    %67 = vector.multi_reduction <add>, %66, %cst_33 [2] : vector<2x8x8xf32> to vector<2x8xf32>
    %68 = vector.shape_cast %67 : vector<2x8xf32> to vector<2x8x1xf32>
    %69 = tpu.reciprocal %68 {approx = true} : vector<2x8x1xf32> -> vector<2x8x1xf32>
    %70 = vector.broadcast %69 : vector<2x8x1xf32> to vector<2x8x8xf32>
    %71 = arith.mulf %66, %70 : vector<2x8x8xf32>
    %72 = arith.truncf %71 : vector<2x8x8xf32> to vector<2x8x8xbf16>
    %cst_34 = arith.constant dense<0.000000e+00> : vector<2x8x16xf32>
    %73 = tpu.matmul %72, %55, %cst_34 {dimension_numbers = #tpu.dot_dimension_numbers<[2], [1], [1], [2], [0, 0, 0, 1, 1, 2], [0], [0]>} : vector<2x8x8xbf16>, vector<2x8x16xbf16>, vector<2x8x16xf32> -> vector<2x8x16xf32>
    %74 = arith.truncf %73 : vector<2x8x16xf32> to vector<2x8x16xbf16>
    %c0_35 = arith.constant 0 : index
    %c0_36 = arith.constant 0 : index
    %c0_37 = arith.constant 0 : index
    %c0_38 = arith.constant 0 : index
    %75 = vector.load %arg10[%c0_35, %c0_36, %c0_37, %c0_38] : memref<2x2x16x32xbf16, #tpu.memory_space<vmem>>, vector<1x2x16x32xbf16>
    %76 = vector.shape_cast %75 : vector<1x2x16x32xbf16> to vector<2x16x32xbf16>
    %cst_39 = arith.constant dense<0.000000e+00> : vector<2x8x32xf32>
    %77 = tpu.matmul %74, %76, %cst_39 {dimension_numbers = #tpu.dot_dimension_numbers<[2], [1], [1], [2], [0, 0, 0, 1, 1, 2], [0], [0]>} : vector<2x8x16xbf16>, vector<2x16x32xbf16>, vector<2x8x32xf32> -> vector<2x8x32xf32>
    %cst_40 = arith.constant dense<0.000000e+00> : vector<8x32xf32>
    %78 = vector.multi_reduction <add>, %77, %cst_40 [0] : vector<2x8x32xf32> to vector<8x32xf32>
    %79 = arith.addf %1, %78 : vector<8x32xf32>
    %80 = vector.extract_strided_slice %4 {offsets = [4, 0], sizes = [1, 32], strides = [1, 1]} : vector<6x32xf32> to vector<1x32xf32>
    %81 = vector.broadcast %80 : vector<1x32xf32> to vector<8x32xf32>
    %82 = arith.addf %79, %81 : vector<8x32xf32>
    %83 = vector.extract_strided_slice %4 {offsets = [2, 0], sizes = [1, 32], strides = [1, 1]} : vector<6x32xf32> to vector<1x32xf32>
    %84 = vector.extract_strided_slice %4 {offsets = [3, 0], sizes = [1, 32], strides = [1, 1]} : vector<6x32xf32> to vector<1x32xf32>
    %cst_41 = arith.constant dense<0.000000e+00> : vector<8xf32>
    %85 = vector.multi_reduction <add>, %82, %cst_41 [1] : vector<8x32xf32> to vector<8xf32>
    %86 = vector.shape_cast %85 : vector<8xf32> to vector<8x1xf32>
    %cst_42 = arith.constant 3.200000e+01 : f32
    %87 = vector.broadcast %cst_42 : f32 to vector<8x1xf32>
    %88 = arith.divf %86, %87 : vector<8x1xf32>
    %89 = vector.broadcast %88 : vector<8x1xf32> to vector<8x32xf32>
    %90 = arith.subf %82, %89 : vector<8x32xf32>
    %91 = arith.mulf %90, %90 : vector<8x32xf32>
    %cst_43 = arith.constant dense<0.000000e+00> : vector<8xf32>
    %92 = vector.multi_reduction <add>, %91, %cst_43 [1] : vector<8x32xf32> to vector<8xf32>
    %93 = vector.shape_cast %92 : vector<8xf32> to vector<8x1xf32>
    %cst_44 = arith.constant 3.200000e+01 : f32
    %94 = vector.broadcast %cst_44 : f32 to vector<8x1xf32>
    %95 = arith.divf %93, %94 : vector<8x1xf32>
    %96 = vector.broadcast %88 : vector<8x1xf32> to vector<8x32xf32>
    %97 = arith.subf %82, %96 : vector<8x32xf32>
    %cst_45 = arith.constant 9.99999974E-6 : f32
    %98 = vector.broadcast %cst_45 : f32 to vector<8x1xf32>
    %99 = arith.addf %95, %98 : vector<8x1xf32>
    %100 = math.rsqrt %99 : vector<8x1xf32>
    %101 = vector.broadcast %100 : vector<8x1xf32> to vector<8x32xf32>
    %102 = arith.mulf %97, %101 : vector<8x32xf32>
    %103 = vector.broadcast %83 : vector<1x32xf32> to vector<8x32xf32>
    %104 = arith.mulf %102, %103 : vector<8x32xf32>
    %105 = vector.broadcast %84 : vector<1x32xf32> to vector<8x32xf32>
    %106 = arith.addf %104, %105 : vector<8x32xf32>
    %107 = arith.truncf %106 : vector<8x32xf32> to vector<8x32xbf16>
    %c0_46 = arith.constant 0 : index
    %c0_47 = arith.constant 0 : index
    %c0_48 = arith.constant 0 : index
    %108 = vector.load %arg11[%c0_46, %c0_47, %c0_48] : memref<2x32x128xbf16, #tpu.memory_space<vmem>>, vector<1x32x128xbf16>
    %109 = vector.shape_cast %108 : vector<1x32x128xbf16> to vector<32x128xbf16>
    %cst_49 = arith.constant dense<0.000000e+00> : vector<8x128xf32>
    %110 = tpu.matmul %107, %109, %cst_49 {dimension_numbers = #tpu.dot_dimension_numbers<[1], [0], [0], [1], [0, 0, 1, 1], [], []>} : vector<8x32xbf16>, vector<32x128xbf16>, vector<8x128xf32> -> vector<8x128xf32>
    %c0_50 = arith.constant 0 : index
    %c0_51 = arith.constant 0 : index
    %c0_52 = arith.constant 0 : index
    %111 = vector.load %arg12[%c0_50, %c0_51, %c0_52] : memref<2x1x128xf32, #tpu.memory_space<vmem>>, vector<1x1x128xf32>
    %112 = vector.shape_cast %111 : vector<1x1x128xf32> to vector<1x128xf32>
    %113 = vector.broadcast %112 : vector<1x128xf32> to vector<8x128xf32>
    %114 = arith.addf %110, %113 : vector<8x128xf32>
    %115 = arith.mulf %114, %114 : vector<8x128xf32>
    %116 = arith.mulf %114, %115 : vector<8x128xf32>
    %cst_53 = arith.constant 4.471500e-02 : f32
    %117 = vector.broadcast %cst_53 : f32 to vector<8x128xf32>
    %118 = arith.mulf %117, %116 : vector<8x128xf32>
    %119 = arith.addf %114, %118 : vector<8x128xf32>
    %cst_54 = arith.constant 0.797884583 : f32
    %120 = vector.broadcast %cst_54 : f32 to vector<8x128xf32>
    %121 = arith.mulf %120, %119 : vector<8x128xf32>
    %122 = math.tanh %121 : vector<8x128xf32>
    %cst_55 = arith.constant 1.000000e+00 : f32
    %123 = vector.broadcast %cst_55 : f32 to vector<8x128xf32>
    %124 = arith.addf %123, %122 : vector<8x128xf32>
    %cst_56 = arith.constant 5.000000e-01 : f32
    %125 = vector.broadcast %cst_56 : f32 to vector<8x128xf32>
    %126 = arith.mulf %125, %124 : vector<8x128xf32>
    %127 = arith.mulf %114, %126 : vector<8x128xf32>
    %128 = arith.truncf %127 : vector<8x128xf32> to vector<8x128xbf16>
    %c0_57 = arith.constant 0 : index
    %c0_58 = arith.constant 0 : index
    %c0_59 = arith.constant 0 : index
    %129 = vector.load %arg13[%c0_57, %c0_58, %c0_59] : memref<2x128x32xbf16, #tpu.memory_space<vmem>>, vector<1x128x32xbf16>
    %130 = vector.shape_cast %129 : vector<1x128x32xbf16> to vector<128x32xbf16>
    %cst_60 = arith.constant dense<0.000000e+00> : vector<8x32xf32>
    %131 = tpu.matmul %128, %130, %cst_60 {dimension_numbers = #tpu.dot_dimension_numbers<[1], [0], [0], [1], [0, 0, 1, 1], [], []>} : vector<8x128xbf16>, vector<128x32xbf16>, vector<8x32xf32> -> vector<8x32xf32>
    %132 = arith.addf %82, %131 : vector<8x32xf32>
    %133 = vector.extract_strided_slice %4 {offsets = [5, 0], sizes = [1, 32], strides = [1, 1]} : vector<6x32xf32> to vector<1x32xf32>
    %134 = vector.broadcast %133 : vector<1x32xf32> to vector<8x32xf32>
    %135 = arith.addf %132, %134 : vector<8x32xf32>
    %c1 = arith.constant 1 : index
    %c0_61 = arith.constant 0 : index
    %c0_62 = arith.constant 0 : index
    %136 = vector.load %arg5[%c1, %c0_61, %c0_62] : memref<2x6x32xf32, #tpu.memory_space<vmem>>, vector<1x6x32xf32>
    %137 = vector.shape_cast %136 : vector<1x6x32xf32> to vector<6x32xf32>
    %c1_63 = arith.constant 1 : index
    %c0_64 = arith.constant 0 : index
    %c0_65 = arith.constant 0 : index
    %c0_66 = arith.constant 0 : index
    %138 = vector.load %arg9[%c1_63, %c0_64, %c0_65, %c0_66] : memref<2x6x1x16xf32, #tpu.memory_space<vmem>>, vector<1x6x1x16xf32>
    %139 = vector.shape_cast %138 : vector<1x6x1x16xf32> to vector<6x1x16xf32>
    %140 = vector.extract_strided_slice %137 {offsets = [0, 0], sizes = [1, 32], strides = [1, 1]} : vector<6x32xf32> to vector<1x32xf32>
    %141 = vector.extract_strided_slice %137 {offsets = [1, 0], sizes = [1, 32], strides = [1, 1]} : vector<6x32xf32> to vector<1x32xf32>
    %cst_67 = arith.constant dense<0.000000e+00> : vector<8xf32>
    %142 = vector.multi_reduction <add>, %135, %cst_67 [1] : vector<8x32xf32> to vector<8xf32>
    %143 = vector.shape_cast %142 : vector<8xf32> to vector<8x1xf32>
    %cst_68 = arith.constant 3.200000e+01 : f32
    %144 = vector.broadcast %cst_68 : f32 to vector<8x1xf32>
    %145 = arith.divf %143, %144 : vector<8x1xf32>
    %146 = vector.broadcast %145 : vector<8x1xf32> to vector<8x32xf32>
    %147 = arith.subf %135, %146 : vector<8x32xf32>
    %148 = arith.mulf %147, %147 : vector<8x32xf32>
    %cst_69 = arith.constant dense<0.000000e+00> : vector<8xf32>
    %149 = vector.multi_reduction <add>, %148, %cst_69 [1] : vector<8x32xf32> to vector<8xf32>
    %150 = vector.shape_cast %149 : vector<8xf32> to vector<8x1xf32>
    %cst_70 = arith.constant 3.200000e+01 : f32
    %151 = vector.broadcast %cst_70 : f32 to vector<8x1xf32>
    %152 = arith.divf %150, %151 : vector<8x1xf32>
    %153 = vector.broadcast %145 : vector<8x1xf32> to vector<8x32xf32>
    %154 = arith.subf %135, %153 : vector<8x32xf32>
    %cst_71 = arith.constant 9.99999974E-6 : f32
    %155 = vector.broadcast %cst_71 : f32 to vector<8x1xf32>
    %156 = arith.addf %152, %155 : vector<8x1xf32>
    %157 = math.rsqrt %156 : vector<8x1xf32>
    %158 = vector.broadcast %157 : vector<8x1xf32> to vector<8x32xf32>
    %159 = arith.mulf %154, %158 : vector<8x32xf32>
    %160 = vector.broadcast %140 : vector<1x32xf32> to vector<8x32xf32>
    %161 = arith.mulf %159, %160 : vector<8x32xf32>
    %162 = vector.broadcast %141 : vector<1x32xf32> to vector<8x32xf32>
    %163 = arith.addf %161, %162 : vector<8x32xf32>
    %164 = arith.truncf %163 : vector<8x32xf32> to vector<8x32xbf16>
    %165 = vector.shape_cast %164 : vector<8x32xbf16> to vector<1x8x32xbf16>
    %166 = vector.shape_cast %165 : vector<1x8x32xbf16> to vector<1x8x32xbf16>
    %167 = vector.broadcast %166 : vector<1x8x32xbf16> to vector<2x8x32xbf16>
    %c1_72 = arith.constant 1 : index
    %c0_73 = arith.constant 0 : index
    %c0_74 = arith.constant 0 : index
    %c0_75 = arith.constant 0 : index
    %168 = vector.load %arg6[%c1_72, %c0_73, %c0_74, %c0_75] : memref<2x2x32x16xbf16, #tpu.memory_space<vmem>>, vector<1x2x32x16xbf16>
    %169 = vector.shape_cast %168 : vector<1x2x32x16xbf16> to vector<2x32x16xbf16>
    %cst_76 = arith.constant dense<0.000000e+00> : vector<2x8x16xf32>
    %170 = tpu.matmul %167, %169, %cst_76 {dimension_numbers = #tpu.dot_dimension_numbers<[2], [1], [1], [2], [0, 0, 0, 1, 1, 2], [0], [0]>} : vector<2x8x32xbf16>, vector<2x32x16xbf16>, vector<2x8x16xf32> -> vector<2x8x16xf32>
    %171 = vector.extract_strided_slice %139 {offsets = [0, 0, 0], sizes = [2, 1, 16], strides = [1, 1, 1]} : vector<6x1x16xf32> to vector<2x1x16xf32>
    %172 = vector.broadcast %171 : vector<2x1x16xf32> to vector<2x8x16xf32>
    %173 = arith.addf %170, %172 : vector<2x8x16xf32>
    %174 = arith.truncf %173 : vector<2x8x16xf32> to vector<2x8x16xbf16>
    %c1_77 = arith.constant 1 : index
    %c0_78 = arith.constant 0 : index
    %c0_79 = arith.constant 0 : index
    %c0_80 = arith.constant 0 : index
    %175 = vector.load %arg7[%c1_77, %c0_78, %c0_79, %c0_80] : memref<2x2x32x16xbf16, #tpu.memory_space<vmem>>, vector<1x2x32x16xbf16>
    %176 = vector.shape_cast %175 : vector<1x2x32x16xbf16> to vector<2x32x16xbf16>
    %cst_81 = arith.constant dense<0.000000e+00> : vector<2x8x16xf32>
    %177 = tpu.matmul %167, %176, %cst_81 {dimension_numbers = #tpu.dot_dimension_numbers<[2], [1], [1], [2], [0, 0, 0, 1, 1, 2], [0], [0]>} : vector<2x8x32xbf16>, vector<2x32x16xbf16>, vector<2x8x16xf32> -> vector<2x8x16xf32>
    %178 = vector.extract_strided_slice %139 {offsets = [2, 0, 0], sizes = [2, 1, 16], strides = [1, 1, 1]} : vector<6x1x16xf32> to vector<2x1x16xf32>
    %179 = vector.broadcast %178 : vector<2x1x16xf32> to vector<2x8x16xf32>
    %180 = arith.addf %177, %179 : vector<2x8x16xf32>
    %181 = arith.truncf %180 : vector<2x8x16xf32> to vector<2x8x16xbf16>
    %c1_82 = arith.constant 1 : index
    %c0_83 = arith.constant 0 : index
    %c0_84 = arith.constant 0 : index
    %c0_85 = arith.constant 0 : index
    %182 = vector.load %arg8[%c1_82, %c0_83, %c0_84, %c0_85] : memref<2x2x32x16xbf16, #tpu.memory_space<vmem>>, vector<1x2x32x16xbf16>
    %183 = vector.shape_cast %182 : vector<1x2x32x16xbf16> to vector<2x32x16xbf16>
    %cst_86 = arith.constant dense<0.000000e+00> : vector<2x8x16xf32>
    %184 = tpu.matmul %167, %183, %cst_86 {dimension_numbers = #tpu.dot_dimension_numbers<[2], [1], [1], [2], [0, 0, 0, 1, 1, 2], [0], [0]>} : vector<2x8x32xbf16>, vector<2x32x16xbf16>, vector<2x8x16xf32> -> vector<2x8x16xf32>
    %185 = vector.extract_strided_slice %139 {offsets = [4, 0, 0], sizes = [2, 1, 16], strides = [1, 1, 1]} : vector<6x1x16xf32> to vector<2x1x16xf32>
    %186 = vector.broadcast %185 : vector<2x1x16xf32> to vector<2x8x16xf32>
    %187 = arith.addf %184, %186 : vector<2x8x16xf32>
    %188 = arith.truncf %187 : vector<2x8x16xf32> to vector<2x8x16xbf16>
    %cst_87 = arith.constant dense<0.000000e+00> : vector<2x8x8xf32>
    %189 = tpu.matmul %174, %181, %cst_87 {dimension_numbers = #tpu.dot_dimension_numbers<[2], [2], [1], [1], [0, 0, 0, 1, 1, 1], [0], [0]>} : vector<2x8x16xbf16>, vector<2x8x16xbf16>, vector<2x8x8xf32> -> vector<2x8x8xf32>
    %cst_88 = arith.constant 2.500000e-01 : f32
    %190 = vector.broadcast %cst_88 : f32 to vector<2x8x8xf32>
    %191 = arith.mulf %189, %190 : vector<2x8x8xf32>
    %192 = vector.shape_cast %2 : vector<8x8xf32> to vector<1x8x8xf32>
    %193 = vector.broadcast %192 : vector<1x8x8xf32> to vector<2x8x8xf32>
    %194 = arith.addf %191, %193 : vector<2x8x8xf32>
    %cst_89 = arith.constant dense<0xFF800000> : vector<2x8xf32>
    %195 = vector.multi_reduction <maximumf>, %194, %cst_89 [2] : vector<2x8x8xf32> to vector<2x8xf32>
    %196 = vector.shape_cast %195 : vector<2x8xf32> to vector<2x8x1xf32>
    %197 = vector.broadcast %196 : vector<2x8x1xf32> to vector<2x8x8xf32>
    %198 = arith.subf %194, %197 : vector<2x8x8xf32>
    %199 = math.exp %198 : vector<2x8x8xf32>
    %cst_90 = arith.constant dense<0.000000e+00> : vector<2x8xf32>
    %200 = vector.multi_reduction <add>, %199, %cst_90 [2] : vector<2x8x8xf32> to vector<2x8xf32>
    %201 = vector.shape_cast %200 : vector<2x8xf32> to vector<2x8x1xf32>
    %202 = tpu.reciprocal %201 {approx = true} : vector<2x8x1xf32> -> vector<2x8x1xf32>
    %203 = vector.broadcast %202 : vector<2x8x1xf32> to vector<2x8x8xf32>
    %204 = arith.mulf %199, %203 : vector<2x8x8xf32>
    %205 = arith.truncf %204 : vector<2x8x8xf32> to vector<2x8x8xbf16>
    %cst_91 = arith.constant dense<0.000000e+00> : vector<2x8x16xf32>
    %206 = tpu.matmul %205, %188, %cst_91 {dimension_numbers = #tpu.dot_dimension_numbers<[2], [1], [1], [2], [0, 0, 0, 1, 1, 2], [0], [0]>} : vector<2x8x8xbf16>, vector<2x8x16xbf16>, vector<2x8x16xf32> -> vector<2x8x16xf32>
    %207 = arith.truncf %206 : vector<2x8x16xf32> to vector<2x8x16xbf16>
    %c1_92 = arith.constant 1 : index
    %c0_93 = arith.constant 0 : index
    %c0_94 = arith.constant 0 : index
    %c0_95 = arith.constant 0 : index
    %208 = vector.load %arg10[%c1_92, %c0_93, %c0_94, %c0_95] : memref<2x2x16x32xbf16, #tpu.memory_space<vmem>>, vector<1x2x16x32xbf16>
    %209 = vector.shape_cast %208 : vector<1x2x16x32xbf16> to vector<2x16x32xbf16>
    %cst_96 = arith.constant dense<0.000000e+00> : vector<2x8x32xf32>
    %210 = tpu.matmul %207, %209, %cst_96 {dimension_numbers = #tpu.dot_dimension_numbers<[2], [1], [1], [2], [0, 0, 0, 1, 1, 2], [0], [0]>} : vector<2x8x16xbf16>, vector<2x16x32xbf16>, vector<2x8x32xf32> -> vector<2x8x32xf32>
    %cst_97 = arith.constant dense<0.000000e+00> : vector<8x32xf32>
    %211 = vector.multi_reduction <add>, %210, %cst_97 [0] : vector<2x8x32xf32> to vector<8x32xf32>
    %212 = arith.addf %135, %211 : vector<8x32xf32>
    %213 = vector.extract_strided_slice %137 {offsets = [4, 0], sizes = [1, 32], strides = [1, 1]} : vector<6x32xf32> to vector<1x32xf32>
    %214 = vector.broadcast %213 : vector<1x32xf32> to vector<8x32xf32>
    %215 = arith.addf %212, %214 : vector<8x32xf32>
    %216 = vector.extract_strided_slice %137 {offsets = [2, 0], sizes = [1, 32], strides = [1, 1]} : vector<6x32xf32> to vector<1x32xf32>
    %217 = vector.extract_strided_slice %137 {offsets = [3, 0], sizes = [1, 32], strides = [1, 1]} : vector<6x32xf32> to vector<1x32xf32>
    %cst_98 = arith.constant dense<0.000000e+00> : vector<8xf32>
    %218 = vector.multi_reduction <add>, %215, %cst_98 [1] : vector<8x32xf32> to vector<8xf32>
    %219 = vector.shape_cast %218 : vector<8xf32> to vector<8x1xf32>
    %cst_99 = arith.constant 3.200000e+01 : f32
    %220 = vector.broadcast %cst_99 : f32 to vector<8x1xf32>
    %221 = arith.divf %219, %220 : vector<8x1xf32>
    %222 = vector.broadcast %221 : vector<8x1xf32> to vector<8x32xf32>
    %223 = arith.subf %215, %222 : vector<8x32xf32>
    %224 = arith.mulf %223, %223 : vector<8x32xf32>
    %cst_100 = arith.constant dense<0.000000e+00> : vector<8xf32>
    %225 = vector.multi_reduction <add>, %224, %cst_100 [1] : vector<8x32xf32> to vector<8xf32>
    %226 = vector.shape_cast %225 : vector<8xf32> to vector<8x1xf32>
    %cst_101 = arith.constant 3.200000e+01 : f32
    %227 = vector.broadcast %cst_101 : f32 to vector<8x1xf32>
    %228 = arith.divf %226, %227 : vector<8x1xf32>
    %229 = vector.broadcast %221 : vector<8x1xf32> to vector<8x32xf32>
    %230 = arith.subf %215, %229 : vector<8x32xf32>
    %cst_102 = arith.constant 9.99999974E-6 : f32
    %231 = vector.broadcast %cst_102 : f32 to vector<8x1xf32>
    %232 = arith.addf %228, %231 : vector<8x1xf32>
    %233 = math.rsqrt %232 : vector<8x1xf32>
    %234 = vector.broadcast %233 : vector<8x1xf32> to vector<8x32xf32>
    %235 = arith.mulf %230, %234 : vector<8x32xf32>
    %236 = vector.broadcast %216 : vector<1x32xf32> to vector<8x32xf32>
    %237 = arith.mulf %235, %236 : vector<8x32xf32>
    %238 = vector.broadcast %217 : vector<1x32xf32> to vector<8x32xf32>
    %239 = arith.addf %237, %238 : vector<8x32xf32>
    %240 = arith.truncf %239 : vector<8x32xf32> to vector<8x32xbf16>
    %c1_103 = arith.constant 1 : index
    %c0_104 = arith.constant 0 : index
    %c0_105 = arith.constant 0 : index
    %241 = vector.load %arg11[%c1_103, %c0_104, %c0_105] : memref<2x32x128xbf16, #tpu.memory_space<vmem>>, vector<1x32x128xbf16>
    %242 = vector.shape_cast %241 : vector<1x32x128xbf16> to vector<32x128xbf16>
    %cst_106 = arith.constant dense<0.000000e+00> : vector<8x128xf32>
    %243 = tpu.matmul %240, %242, %cst_106 {dimension_numbers = #tpu.dot_dimension_numbers<[1], [0], [0], [1], [0, 0, 1, 1], [], []>} : vector<8x32xbf16>, vector<32x128xbf16>, vector<8x128xf32> -> vector<8x128xf32>
    %c1_107 = arith.constant 1 : index
    %c0_108 = arith.constant 0 : index
    %c0_109 = arith.constant 0 : index
    %244 = vector.load %arg12[%c1_107, %c0_108, %c0_109] : memref<2x1x128xf32, #tpu.memory_space<vmem>>, vector<1x1x128xf32>
    %245 = vector.shape_cast %244 : vector<1x1x128xf32> to vector<1x128xf32>
    %246 = vector.broadcast %245 : vector<1x128xf32> to vector<8x128xf32>
    %247 = arith.addf %243, %246 : vector<8x128xf32>
    %248 = arith.mulf %247, %247 : vector<8x128xf32>
    %249 = arith.mulf %247, %248 : vector<8x128xf32>
    %cst_110 = arith.constant 4.471500e-02 : f32
    %250 = vector.broadcast %cst_110 : f32 to vector<8x128xf32>
    %251 = arith.mulf %250, %249 : vector<8x128xf32>
    %252 = arith.addf %247, %251 : vector<8x128xf32>
    %cst_111 = arith.constant 0.797884583 : f32
    %253 = vector.broadcast %cst_111 : f32 to vector<8x128xf32>
    %254 = arith.mulf %253, %252 : vector<8x128xf32>
    %255 = math.tanh %254 : vector<8x128xf32>
    %cst_112 = arith.constant 1.000000e+00 : f32
    %256 = vector.broadcast %cst_112 : f32 to vector<8x128xf32>
    %257 = arith.addf %256, %255 : vector<8x128xf32>
    %cst_113 = arith.constant 5.000000e-01 : f32
    %258 = vector.broadcast %cst_113 : f32 to vector<8x128xf32>
    %259 = arith.mulf %258, %257 : vector<8x128xf32>
    %260 = arith.mulf %247, %259 : vector<8x128xf32>
    %261 = arith.truncf %260 : vector<8x128xf32> to vector<8x128xbf16>
    %c1_114 = arith.constant 1 : index
    %c0_115 = arith.constant 0 : index
    %c0_116 = arith.constant 0 : index
    %262 = vector.load %arg13[%c1_114, %c0_115, %c0_116] : memref<2x128x32xbf16, #tpu.memory_space<vmem>>, vector<1x128x32xbf16>
    %263 = vector.shape_cast %262 : vector<1x128x32xbf16> to vector<128x32xbf16>
    %cst_117 = arith.constant dense<0.000000e+00> : vector<8x32xf32>
    %264 = tpu.matmul %261, %263, %cst_117 {dimension_numbers = #tpu.dot_dimension_numbers<[1], [0], [0], [1], [0, 0, 1, 1], [], []>} : vector<8x128xbf16>, vector<128x32xbf16>, vector<8x32xf32> -> vector<8x32xf32>
    %265 = arith.addf %215, %264 : vector<8x32xf32>
    %266 = vector.extract_strided_slice %137 {offsets = [5, 0], sizes = [1, 32], strides = [1, 1]} : vector<6x32xf32> to vector<1x32xf32>
    %267 = vector.broadcast %266 : vector<1x32xf32> to vector<8x32xf32>
    %268 = arith.addf %265, %267 : vector<8x32xf32>
    %c0_118 = arith.constant 0 : index
    %c0_119 = arith.constant 0 : index
    %269 = vector.load %arg4[%c0_118, %c0_119] : memref<2x32xf32, #tpu.memory_space<vmem>>, vector<1x32xf32>
    %c1_120 = arith.constant 1 : index
    %c0_121 = arith.constant 0 : index
    %270 = vector.load %arg4[%c1_120, %c0_121] : memref<2x32xf32, #tpu.memory_space<vmem>>, vector<1x32xf32>
    %cst_122 = arith.constant dense<0.000000e+00> : vector<8xf32>
    %271 = vector.multi_reduction <add>, %268, %cst_122 [1] : vector<8x32xf32> to vector<8xf32>
    %272 = vector.shape_cast %271 : vector<8xf32> to vector<8x1xf32>
    %cst_123 = arith.constant 3.200000e+01 : f32
    %273 = vector.broadcast %cst_123 : f32 to vector<8x1xf32>
    %274 = arith.divf %272, %273 : vector<8x1xf32>
    %275 = vector.broadcast %274 : vector<8x1xf32> to vector<8x32xf32>
    %276 = arith.subf %268, %275 : vector<8x32xf32>
    %277 = arith.mulf %276, %276 : vector<8x32xf32>
    %cst_124 = arith.constant dense<0.000000e+00> : vector<8xf32>
    %278 = vector.multi_reduction <add>, %277, %cst_124 [1] : vector<8x32xf32> to vector<8xf32>
    %279 = vector.shape_cast %278 : vector<8xf32> to vector<8x1xf32>
    %cst_125 = arith.constant 3.200000e+01 : f32
    %280 = vector.broadcast %cst_125 : f32 to vector<8x1xf32>
    %281 = arith.divf %279, %280 : vector<8x1xf32>
    %282 = vector.broadcast %274 : vector<8x1xf32> to vector<8x32xf32>
    %283 = arith.subf %268, %282 : vector<8x32xf32>
    %cst_126 = arith.constant 9.99999974E-6 : f32
    %284 = vector.broadcast %cst_126 : f32 to vector<8x1xf32>
    %285 = arith.addf %281, %284 : vector<8x1xf32>
    %286 = math.rsqrt %285 : vector<8x1xf32>
    %287 = vector.broadcast %286 : vector<8x1xf32> to vector<8x32xf32>
    %288 = arith.mulf %283, %287 : vector<8x32xf32>
    %289 = vector.broadcast %269 : vector<1x32xf32> to vector<8x32xf32>
    %290 = arith.mulf %288, %289 : vector<8x32xf32>
    %291 = vector.broadcast %270 : vector<1x32xf32> to vector<8x32xf32>
    %292 = arith.addf %290, %291 : vector<8x32xf32>
    %293 = arith.truncf %292 : vector<8x32xf32> to vector<8x32xbf16>
    %c0_127 = arith.constant 0 : index
    %c0_128 = arith.constant 0 : index
    %294 = vector.load %arg3[%c0_127, %c0_128] : memref<128x32xbf16, #tpu.memory_space<vmem>>, vector<128x32xbf16>
    %cst_129 = arith.constant dense<0.000000e+00> : vector<8x128xf32>
    %295 = tpu.matmul %293, %294, %cst_129 {dimension_numbers = #tpu.dot_dimension_numbers<[1], [1], [0], [0], [0, 0, 1, 0], [], []>} : vector<8x32xbf16>, vector<128x32xbf16>, vector<8x128xf32> -> vector<8x128xf32>
    %296 = vector.shape_cast %295 : vector<8x128xf32> to vector<1x8x128xf32>
    %c0_130 = arith.constant 0 : index
    %c0_131 = arith.constant 0 : index
    %c0_132 = arith.constant 0 : index
    %297 = vector.load %arg14[%c0_130, %c0_131, %c0_132] : memref<1x8x128xf32, #tpu.memory_space<vmem>>, vector<1x8x128xf32>
    tpu.vector_store %arg14[%c0_130, %c0_131, %c0_132], %296 {strides = array<i32>} : memref<1x8x128xf32, #tpu.memory_space<vmem>>, vector<1x8x128xf32>,
    return
  }
  func.func @transform_0(%arg0: i32) -> (i32, i32, i32) {
    %c0_i32 = arith.constant 0 : i32
    %c0_i32_0 = arith.constant 0 : i32
    %c0_i32_1 = arith.constant 0 : i32
    return %arg0, %c0_i32, %c0_i32_0 : i32, i32, i32
  }
  func.func @transform_1(%arg0: i32) -> (i32, i32) {
    %c0_i32 = arith.constant 0 : i32
    %c0_i32_0 = arith.constant 0 : i32
    %c0_i32_1 = arith.constant 0 : i32
    return %c0_i32, %c0_i32_0 : i32, i32
  }
  func.func @transform_2(%arg0: i32) -> (i32, i32) {
    %c0_i32 = arith.constant 0 : i32
    %c0_i32_0 = arith.constant 0 : i32
    %c0_i32_1 = arith.constant 0 : i32
    return %c0_i32, %c0_i32_0 : i32, i32
  }
  func.func @transform_3(%arg0: i32) -> (i32, i32) {
    %c0_i32 = arith.constant 0 : i32
    %c0_i32_0 = arith.constant 0 : i32
    %c0_i32_1 = arith.constant 0 : i32
    return %c0_i32, %c0_i32_0 : i32, i32
  }
  func.func @transform_4(%arg0: i32) -> (i32, i32, i32) {
    %c0_i32 = arith.constant 0 : i32
    %c0_i32_0 = arith.constant 0 : i32
    %c0_i32_1 = arith.constant 0 : i32
    %c0_i32_2 = arith.constant 0 : i32
    return %c0_i32, %c0_i32_0, %c0_i32_1 : i32, i32, i32
  }
  func.func @transform_5(%arg0: i32) -> (i32, i32, i32, i32) {
    %c0_i32 = arith.constant 0 : i32
    %c0_i32_0 = arith.constant 0 : i32
    %c0_i32_1 = arith.constant 0 : i32
    %c0_i32_2 = arith.constant 0 : i32
    %c0_i32_3 = arith.constant 0 : i32
    return %c0_i32, %c0_i32_0, %c0_i32_1, %c0_i32_2 : i32, i32, i32, i32
  }
  func.func @transform_6(%arg0: i32) -> (i32, i32, i32, i32) {
    %c0_i32 = arith.constant 0 : i32
    %c0_i32_0 = arith.constant 0 : i32
    %c0_i32_1 = arith.constant 0 : i32
    %c0_i32_2 = arith.constant 0 : i32
    %c0_i32_3 = arith.constant 0 : i32
    return %c0_i32, %c0_i32_0, %c0_i32_1, %c0_i32_2 : i32, i32, i32, i32
  }
  func.func @transform_7(%arg0: i32) -> (i32, i32, i32, i32) {
    %c0_i32 = arith.constant 0 : i32
    %c0_i32_0 = arith.constant 0 : i32
    %c0_i32_1 = arith.constant 0 : i32
    %c0_i32_2 = arith.constant 0 : i32
    %c0_i32_3 = arith.constant 0 : i32
    return %c0_i32, %c0_i32_0, %c0_i32_1, %c0_i32_2 : i32, i32, i32, i32
  }
  func.func @transform_8(%arg0: i32) -> (i32, i32, i32, i32) {
    %c0_i32 = arith.constant 0 : i32
    %c0_i32_0 = arith.constant 0 : i32
    %c0_i32_1 = arith.constant 0 : i32
    %c0_i32_2 = arith.constant 0 : i32
    %c0_i32_3 = arith.constant 0 : i32
    return %c0_i32, %c0_i32_0, %c0_i32_1, %c0_i32_2 : i32, i32, i32, i32
  }
  func.func @transform_9(%arg0: i32) -> (i32, i32, i32, i32) {
    %c0_i32 = arith.constant 0 : i32
    %c0_i32_0 = arith.constant 0 : i32
    %c0_i32_1 = arith.constant 0 : i32
    %c0_i32_2 = arith.constant 0 : i32
    %c0_i32_3 = arith.constant 0 : i32
    return %c0_i32, %c0_i32_0, %c0_i32_1, %c0_i32_2 : i32, i32, i32, i32
  }
  func.func @transform_10(%arg0: i32) -> (i32, i32, i32) {
    %c0_i32 = arith.constant 0 : i32
    %c0_i32_0 = arith.constant 0 : i32
    %c0_i32_1 = arith.constant 0 : i32
    %c0_i32_2 = arith.constant 0 : i32
    return %c0_i32, %c0_i32_0, %c0_i32_1 : i32, i32, i32
  }
  func.func @transform_11(%arg0: i32) -> (i32, i32, i32) {
    %c0_i32 = arith.constant 0 : i32
    %c0_i32_0 = arith.constant 0 : i32
    %c0_i32_1 = arith.constant 0 : i32
    %c0_i32_2 = arith.constant 0 : i32
    return %c0_i32, %c0_i32_0, %c0_i32_1 : i32, i32, i32
  }
  func.func @transform_12(%arg0: i32) -> (i32, i32, i32) {
    %c0_i32 = arith.constant 0 : i32
    %c0_i32_0 = arith.constant 0 : i32
    %c0_i32_1 = arith.constant 0 : i32
    %c0_i32_2 = arith.constant 0 : i32
    return %c0_i32, %c0_i32_0, %c0_i32_1 : i32, i32, i32
  }
  func.func @transform_13(%arg0: i32) -> (i32, i32, i32) {
    %c0_i32 = arith.constant 0 : i32
    %c0_i32_0 = arith.constant 0 : i32
    %c0_i32_1 = arith.constant 0 : i32
    return %arg0, %c0_i32, %c0_i32_0 : i32, i32, i32
  }
}

</mosaic_0001>

<bundles_post_ra>
// kernel: implicit_model_forward.1
= control target key start
LH: loop header
LB: loop body
LE: loop exit
PB: predicated region body
PF: predicated region fallthrough
CT: control target
= control target key end

     0   :  { %s3922_s0 = inlined_call_operand.vmem [shape: f32[2,8,32], index: 0, kind: input, shape index: {}]   ;;  %s3923_s1 = inlined_call_operand.vmem [shape: f32[8,8], index: 1, kind: input, shape index: {}]   ;;  %s3924_s2 = inlined_call_operand.vmem [shape: bf16[128,32], index: 2, kind: input, shape index: {}]   ;;  %s3925_s3 = inlined_call_operand.vmem [shape: f32[2,32], index: 3, kind: input, shape index: {}]   ;;  %s3926_s4 = inlined_call_operand.vmem [shape: f32[2,6,32], index: 4, kind: input, shape index: {}]   ;;  %s3927_s5 = inlined_call_operand.vmem [shape: bf16[2,2,32,16], index: 5, kind: input, shape index: {}]   ;;  %s3928_s6 = inlined_call_operand.vmem [shape: bf16[2,2,32,16], index: 6, kind: input, shape index: {}]   ;;  %s3929_s7 = inlined_call_operand.vmem [shape: bf16[2,2,32,16], index: 7, kind: input, shape index: {}]   ;;  %s3930_s8 = inlined_call_operand.vmem [shape: f32[2,6,1,16], index: 8, kind: input, shape index: {}]   ;;  %s3931_s9 = inlined_call_operand.vmem [shape: bf16[2,2,16,32], index: 9, kind: input, shape index: {}]   ;;  %s3932_s10 = inlined_call_operand.vmem [shape: bf16[2,32,128], index: 10, kind: input, shape index: {}]   ;;  %s3933_s11 = inlined_call_operand.vmem [shape: f32[2,1,128], index: 11, kind: input, shape index: {}]   ;;  %s3934_s12 = inlined_call_operand.vmem [shape: bf16[2,128,32], index: 12, kind: input, shape index: {}]   ;;  %s3935_s13 = inlined_call_operand.hbm [shape: f32[2,8,128], index: 13, kind: output, shape index: {}]  }
   0x1   :  { %3936 = sst [smem:[#allocation5_spill]] %s3922_s0 }
   0x2   :  { %3937 = sst [smem:[#allocation6_spill]] %s3923_s1 }
   0x3   :  { %3938 = sst [smem:[#allocation7_spill]] %s3924_s2 }
   0x4   :  { %18 = vsyncpa [#allocation3], 0 }
   0x5   :  { %20 = vsyncpa [#allocation3 + $0x1], 0  ;;  %s3336_s25 = smov 0   ;;  %s3338_s26 = smov 0  }
   0x6   :  { %s3340_s27 = smov 0   ;;  %s3342_s28 = smov 0  }
   0x7 LB: > { %s3357_s29 = sadd.s32 4294967295, %s3261_s28   ;;  %s2570_s30 = sadd.s32 4294967294, %s3261_s28   ;;  %s3261_s28 = sphi %s3342_s28, %s3947_s28   ;;  %s3257_s27 = sphi %s3340_s27, %s3946_s27   ;;  %s3253_s26 = sphi %s3338_s26, %s3945_s26   ;;  %s3249_s25 = sphi %s3336_s25, %s3944_s25  }
   0x8   : > { %s3361_s14 = sadd.s32 1, %s3261_s28   ;;  %s311_s15 = sadd.s32 1, %s3257_s27 }
   0x9   : > { %s308_s16 = ssub.s32 %s3261_s28, %s3361_s14  ;;  %p321_p0 = scmp.ne.s32.totalorder %s3257_s27, %s3253_s26 }
   0xa   : > { %p309_p1 = scmp.eq.s32.totalorder %s308_s16, 0  ;;  %p322_p2 = scmp.eq.s32.totalorder %s3357_s29, 1 }
   0xb   : > { %p327_p3 = scmp.ne.s32.totalorder %s3253_s26, %s3249_s25  ;;  %p328_p4 = scmp.eq.s32.totalorder %s2570_s30, 1 }
   0xc   : > { %s3372_s17 = scalar_select %p309_p1, %s3257_s27, %s311_s15  }
   0xd   : > { %p3374_p5 = por %p322_p2, %p321_p0  ;;  %p3378_p6 = por %p328_p4, %p327_p3 }
   0xe   : > { %p2573_p7 = scmp.ge.s32.totalorder %s3261_s28, 1  ;;  %p389_p8 = scmp.lt.s32.totalorder %s3261_s28, 3 }
  0x10   : > { %p390_p9 = pnand %p2573_p7, %p389_p8 }
  0x11   : > { %p432_p10 = scmp.lt.s32.totalorder (!%p390_p9), %s3357_s29, 1  ;;  %vm446_vm0 = vcmask (!%p390_p9), 261120   ;;  %s3941_s0 = sld [smem:[#allocation5_spill]] (!%p390_p9)  ;;  %v3113_v7 = vld [vmem:[%s3927_s5] sm:$0xff] (!%p390_p9)   ;;  %v3114_v8 = vld [vmem:[%s3929_s7 + $0x10] sm:$0xff] (!%p390_p9)   ;;  %v3263_v9 = vmov (!%p390_p9), 0.0   ;;  %v461_v14 = vlaneseq (!%p390_p9) }
  0x12   : > { %393 = sbr.rel (%p390_p9) target bundleno = 5176 (0x1438), region = 72  ;;  %2828 = vmatprep.subr.bf16.mxu0 (!%p390_p9), %v3263_v9  ;;  %2868 = vmatprep.subr.bf16.mxu1 (!%p390_p9), %v3263_v9  ;;  %v3115_v10 = vld [vmem:[%s3927_s5 + $0x8] sm:$0xff] (!%p390_p9)   ;;  %v3116_v11 = vld [vmem:[%s3929_s7 + $0x18] sm:$0xff] (!%p390_p9)   ;;  %vm3264_vm1 = vmmov (!%p390_p9), 0   ;;  %v3423_v18 = vld [vmem:[%s3926_s4] sm:$0x3f] (!%p390_p9) }
  0x13   : > { %2829 = vmatpush3.bf16.msra.mxu0 (!%p390_p9), %v3113_v7  ;;  %2869 = vmatpush3.bf16.msra.mxu1 (!%p390_p9), %v3114_v8  ;;  %v3417_v16 = vshrl.u32 (!%p390_p9), %v461_v14, 7  ;;  %v3117_v26 = vld [vmem:[%s3927_s5 + $0x10] sm:$0xff] (!%p390_p9)   ;;  %v3118_v28 = vld [vmem:[%s3927_s5 + $0x18] sm:$0xff] (!%p390_p9)   ;;  %v3119_v29 = vld [vmem:[%s3928_s6] sm:$0xff] (!%p390_p9)   ;;  %vm853_vm2 = vcmask (!%p390_p9), 130048   ;;  %vm978_vm3 = vcmask (!%p390_p9), 1043456  }
  0x14   : > { %2830 = vmatprep.subr.bf16.mxu0 (!%p390_p9), %v3263_v9  ;;  %2870 = vmatprep.subr.bf16.mxu1 (!%p390_p9), %v3263_v9  ;;  %v3120_v30 = vld [vmem:[%s3928_s6 + $0x8] sm:$0xff] (!%p390_p9)   ;;  %v3121_v31 = vld [vmem:[%s3928_s6 + $0x10] sm:$0xff] (!%p390_p9)   ;;  %v3122_v32 = vld [vmem:[%s3928_s6 + $0x18] sm:$0xff] (!%p390_p9)   ;;  %s3942_s1 = sld [smem:[#allocation6_spill]] (!%p390_p9)  ;;  %vm950_vm4 = vcmask (!%p390_p9), 64512   ;;  %s3943_s2 = sld [smem:[#allocation7_spill]] (!%p390_p9) }
  0x15   : > { %2832 = vmatprep.mubr.msk.bf16.mxu0 (!%p390_p9), %vm3264_vm1, %v3263_v9  ;;  %2872 = vmatprep.mubr.msk.bf16.mxu1 (!%p390_p9), %vm3264_vm1, %v3263_v9  ;;  %v463_v17 = vsub.s32 (!%p390_p9), 0, %v3417_v16  ;;  %v468_v19 = vsub.s32 (!%p390_p9), 1, %v3417_v16  ;;  %v3123_v33 = vld [vmem:[%s3929_s7] sm:$0xff] (!%p390_p9)   ;;  %v3124_v34 = vld [vmem:[%s3929_s7 + $0x8] sm:$0xff] (!%p390_p9)   ;;  %s429_s23 = sand.u32 (!%p390_p9), 1, %s3253_s26  }
  0x16   : > { %v2584_v47 = vld [vmem:[%s3930_s8 + $0x2] ss:$0 sm:$0xff] (!%p390_p9)  ;;  %v2576_v54 = vld [vmem:[%s3930_s8] ss:$0 sm:$0xff] (!%p390_p9)  ;;  %v2585_v56 = vld [vmem:[%s3930_s8 + $0x3] ss:$0 sm:$0xff] (!%p390_p9) }
  0x17   : > { %2831 = vmatpush3.bf16.msra.mxu0 (!%p390_p9), %v3115_v10  ;;  %2871 = vmatpush3.bf16.msra.mxu1 (!%p390_p9), %v3116_v11  ;;  %v464_v20 = vrot.slane (!%p390_p9), %v3423_v18, %v463_v17  ;;  %v469_v22 = vrot.slane (!%p390_p9), %v3423_v18, %v468_v19  ;;  %v2593_v61 = vld [vmem:[%s3930_s8 + $0x5] ss:$0 sm:$0xff] (!%p390_p9)  ;;  %s2498_s22 = scalar_lea.sflag (!%p390_p9), [#allocation3], %s429_s23 }
  0x18   : > { %2836 = vmatprep.subr.bf16.mxu0 (!%p390_p9), %v3263_v9  ;;  %2882 = vmatprep.subr.bf16.mxu1 (!%p390_p9), %v3263_v9 }
  0x19   : > { %s433_s20 = scalar_select %p432_p10, %s3357_s29, 1 }
  0x1b   : > { %s2575_s21 = sshll.u32 %s433_s20, 3 }
  0x1c   : > { %s435_s24 = scalar_lea.vmem %s3941_s0, %s2575_s21  ;;  %s2732_s0 = sshll.u32 %s3357_s29, 7 }
  0x1d   : > { %v3389_v0 = vld [vmem:[%s435_s24] sm:$0xff]  ;;  %s2574_s24 = sshll.u32 %s429_s23, 3  ;;  %s3882_s21 = scalar_lea.hbm %s3935_s13, %s2732_s0 }
  0x1e   : > { %v447_v1 = vsel %vm446_vm0, %v3389_v0, 0.0  ;;  %s431_s30 = scalar_lea.vmem [#allocation2], %s2574_s24  ;;  %s3265_s29 = smov [#allocation2]  }
  0x1f   : > { %448 = vadd.xlane.f32.xlu0 %v447_v1  ;;  %s2511_s15 = sshll.u32 %s431_s30, 4  ;;  %s3203_s24 = sshll.u32 %s3265_s29, 4  ;;  %s3877_s15 = int_to_ptr.vmem [resolvable:$true] %s2511_s15  ;;  %s3204_s24 = int_to_ptr.vmem [resolvable:$false] %s3203_s24 }
  0x20   : > { %p3206_p0 = scmp.lt.s32.totalorder %s3877_s15, %s3204_s24 }
  0xac   : > { %v449_v2 = vpop.xlane.xlu0 %448 }
  0xad   : > { %v451_v3 = vmul.f32 0.03125, %v449_v2 }
  0xaf   : > { %v452_v4 = vsub.f32 %v3389_v0, %v451_v3  ;;  %v2577_v3 = vld [vmem:[%s3930_s8 + $0x1] ss:$0 sm:$0xff] }
  0xb1   : > { %v453_v5 = vmul.f32 %v452_v4, %v452_v4 }
  0xb3   : > { %v454_v6 = vsel %vm446_vm0, %v453_v5, 0.0 }
  0xb4   : > { %455 = vadd.xlane.f32.xlu0 %v454_v6  ;;  %v2592_v6 = vld [vmem:[%s3930_s8 + $0x4] ss:$0 sm:$0xff] }
 0x141   : > { %v456_v12 = vpop.xlane.xlu0 %455 }
 0x142   : > { %v457_v13 = vmul.f32 0.03125, %v456_v12 }
 0x144   : > { %v458_v15 = vadd.f32 1e-05, %v457_v13 }
 0x146   : > { %3169 = vrsqrt.f32 %v458_v15 }
 0x150   : > { %v3170_v21 = vpop.eup %3169 }
 0x151   : > { %v460_v23 = vmul.f32 %v3170_v21, %v452_v4 }
 0x153   : > { %v465_v24 = vmul.f32 %v464_v20, %v460_v23 }
 0x155   : > { %v470_v25 = vadd.f32 %v469_v22, %v465_v24  ;;  %v3517_v24 = vld [vmem:[%s3942_s1] sm:$0xff]  ;;  %s3199_s1 = scalar_lea.vmem %s3877_s15, 128 }
 0x156   : > { %p3200_p11 = scmp.ne.s32.totalorder %s3877_s15, %s3199_s1 }
 0x157   : > { %v471_v27 = vpack.c.bf16 %v470_v25, %v470_v25 }
 0x158   : > { %p3201_p12 = pnand %p3200_p11, %p3374_p5 }
 0x159   : > { %2833 = vmatmul.mubr.msk.bf16.vlgmr.msra.gmra.mrb[0].mxu0 %vm446_vm0, %v471_v27  ;;  %2873 = vmatmul.mubr.msk.bf16.vlgmr.msra.gmra.mrb[0].mxu1 %vm446_vm0, %v471_v27 }
 0x15a   : > { %2837 = vmatpush3.bf16.msra.mxu0 %v3117_v26  ;;  %2840 = vmatprep.mubr.msk.bf16.mxu0 %vm3264_vm1, %v3263_v9  ;;  %p3202_p13 = pneg %p3201_p12 }
 0x15b   : > { %2838 = vmatprep.subr.bf16.mxu0 %v3263_v9  ;;  %2884 = vmatprep.mubr.msk.bf16.mxu1 %vm3264_vm1, %v3263_v9 }
 0x15e   : > { %2839 = vmatpush3.bf16.msra.mxu0 %v3118_v28 }
 0x15f   : > { %2844 = vmatprep.subr.bf16.mxu0 %v3263_v9 }
 0x161   : > { %2841 = vmatmul.mubr.msk.bf16.vlgmr.msra.gmra.mrb[4].mxu0 %vm446_vm0, %v471_v27 }
 0x162   : > { %2845 = vmatpush3.bf16.msra.mxu0 %v3119_v29  ;;  %2848 = vmatprep.mubr.msk.bf16.mxu0 %vm3264_vm1, %v3263_v9 }
 0x163   : > { %2846 = vmatprep.subr.bf16.mxu0 %v3263_v9 }
 0x166   : > { %2847 = vmatpush3.bf16.msra.mxu0 %v3120_v30 }
 0x167   : > { %2852 = vmatprep.subr.bf16.mxu0 %v3263_v9 }
 0x169   : > { %2849 = vmatmul.mubr.msk.bf16.vlgmr.msra.gmra.mrb[8].mxu0 %vm446_vm0, %v471_v27 }
 0x16a   : > { %2853 = vmatpush3.bf16.msra.mxu0 %v3121_v31  ;;  %2856 = vmatprep.mubr.msk.bf16.mxu0 %vm3264_vm1, %v3263_v9 }
 0x16b   : > { %2854 = vmatprep.subr.bf16.mxu0 %v3263_v9 }
 0x16e   : > { %2855 = vmatpush3.bf16.msra.mxu0 %v3122_v32 }
 0x16f   : > { %2860 = vmatprep.subr.bf16.mxu0 %v3263_v9 }
 0x171   : > { %2857 = vmatmul.mubr.msk.bf16.vlgmr.msra.gmra.mrb[12].mxu0 %vm446_vm0, %v471_v27 }
 0x172   : > { %2861 = vmatpush3.bf16.msra.mxu0 %v3123_v33  ;;  %2864 = vmatprep.mubr.msk.bf16.mxu0 %vm3264_vm1, %v3263_v9 }
 0x173   : > { %2862 = vmatprep.subr.bf16.mxu0 %v3263_v9 }
 0x176   : > { %2863 = vmatpush3.bf16.msra.mxu0 %v3124_v34 }
 0x177   : > { %2876 = vmatprep.subr.bf16.mxu0 %v3263_v9 }
 0x179   : > { %2865 = vmatmul.mubr.msk.bf16.vlgmr.msra.gmra.mrb[16].mxu0 %vm446_vm0, %v471_v27 }
 0x17a   : > { %2878 = vmatprep.mubr.msk.bf16.mxu0 %vm3264_vm1, %v3263_v9 }
 0x22c   : > { %v541_v35 = vpop.f32.mrb[0].mxu0  ;;  %v845_v36 = vpop.f32.mrb[0].mxu1 }
 0x22d   : > { %v2834_v37 = vpop.f32.mrb[1].mxu0  ;;  %v2874_v38 = vpop.f32.mrb[1].mxu1  ;;  %v542_v57 = vadd.f32 %v2576_v54, %v541_v35  ;;  %v846_v4 = vadd.f32 %v2593_v61, %v845_v36 }
 0x22e   : > { %v544_v39 = vpop.f32.mrb[2].mxu0  ;;  %v848_v40 = vpop.f32.mrb[2].mxu1 }
 0x22f   : > { %v2835_v41 = vpop.f32.mrb[3].mxu0  ;;  %v2875_v42 = vpop.f32.mrb[3].mxu1  ;;  %v599_v63 = vpack.c.bf16 %v542_v57, %v542_v57  ;;  %v852_v10 = vpack.c.bf16 %v846_v4, %v846_v4  ;;  %v3126_v57 = vld [vmem:[%s3931_s9 + $0x8] sm:$0xff]  }
 0x231   : > { %v1026_v21 = vsel %vm978_vm3, %v852_v10, 0  ;;  %v1178_v10 = vsub.s32 4, %v3417_v16 }
 0x234   : > { %v593_v43 = vpop.f32.mrb[4].mxu0 }
 0x235   : > { %v2842_v44 = vpop.f32.mrb[5].mxu0  ;;  %v594_v7 = vadd.f32 %v2577_v3, %v593_v43 }
 0x236   : > { %v596_v45 = vpop.f32.mrb[6].mxu0 }
 0x237   : > { %v2843_v46 = vpop.f32.mrb[7].mxu0  ;;  %v600_v14 = vpack.c.bf16 %v594_v7, %v594_v7 }
 0x23c   : > { %v667_v48 = vpop.f32.mrb[8].mxu0 }
 0x23d   : > { %v668_v49 = vadd.f32 %v2584_v47, %v667_v48  ;;  %v2850_v50 = vpop.f32.mrb[9].mxu0 }
 0x23e   : > { %v670_v51 = vpop.f32.mrb[10].mxu0 }
 0x23f   : > { %v725_v52 = vpack.c.bf16 %v668_v49, %v668_v49  ;;  %v2851_v53 = vpop.f32.mrb[11].mxu0 }
 0x241   : > { %v858_v55 = vsel %vm853_vm2, %v725_v52, 0 }
 0x242   : > { %2877 = vmatpush3.bf16.xpose.msra.mxu0 %v858_v55 }
 0x243   : > { %2888 = vmatprep.subr.bf16.mxu0 %v3263_v9 }
 0x244   : > { %v719_v58 = vpop.f32.mrb[12].mxu0 }
 0x245   : > { %v720_v59 = vadd.f32 %v2585_v56, %v719_v58  ;;  %v2858_v60 = vpop.f32.mrb[13].mxu0  ;;  %v3125_v56 = vld [vmem:[%s3931_s9] sm:$0xff]  }
 0x246   : > { %v722_v62 = vpop.f32.mrb[14].mxu0 }
 0x247   : > { %v726_v1 = vpack.c.bf16 %v720_v59, %v720_v59  ;;  %v2859_v2 = vpop.f32.mrb[15].mxu0 }
 0x249   : > { %v904_v5 = vsel %vm853_vm2, %v726_v1, 0  ;;  %2879 = vmatmul.mubr.msk.bf16.vlgmr.msra.gmra.mrb[20].mxu0 %vm853_vm2, %v599_v63 }
 0x24a   : > { %2883 = vmatpush3.bf16.xpose.msra.mxu1 %v904_v5  ;;  %2890 = vmatprep.mubr.msk.bf16.mxu0 %vm3264_vm1, %v3263_v9 }
 0x24b   : > { %2894 = vmatprep.subr.bf16.mxu1 %v3263_v9 }
 0x24c   : > { %v793_v8 = vpop.f32.mrb[16].mxu0 }
 0x24d   : > { %v794_v11 = vadd.f32 %v2592_v6, %v793_v8  ;;  %v2866_v12 = vpop.f32.mrb[17].mxu0 }
 0x24e   : > { %v796_v13 = vpop.f32.mrb[18].mxu0 }
 0x24f   : > { %v851_v15 = vpack.c.bf16 %v794_v11, %v794_v11  ;;  %v2867_v20 = vpop.f32.mrb[19].mxu0 }
 0x251   : > { %v980_v22 = vsel %vm978_vm3, %v851_v15, 0  ;;  %2885 = vmatmul.mubr.msk.bf16.vlgmr.msra.gmra.mrb[4].mxu1 %vm853_vm2, %v600_v14 }
 0x252   : > { %2889 = vmatpush3.bf16.msra.mxu0 %v980_v22  ;;  %2895 = vmatpush3.bf16.msra.mxu1 %v1026_v21  ;;  %v1179_v21 = vrot.slane %v3423_v18, %v1178_v10 }
 0x253   : > { %2896 = vmatprep.mubr.msk.bf16.mxu1 %vm3264_vm1, %v3263_v9  ;;  %2900 = vmatprep.subr.bf16.mxu0 %v3263_v9 }
 0x254   : > { %2906 = vmatprep.subr.bf16.mxu1 %v3263_v9 }
 0x31c   : > { %v894_v23 = vpop.f32.mrb[20].mxu0 }
 0x31d   : > { %v946_v25 = vmul.f32 0.25, %v894_v23  ;;  %v2880_v26 = vpop.f32.mrb[21].mxu0 }
 0x31e   : > { %v897_v27 = vpop.f32.mrb[22].mxu0 }
 0x31f   : > { %v2881_v28 = vpop.f32.mrb[23].mxu0  ;;  %v948_v29 = vadd.f32 %v946_v25, %v3517_v24 }
 0x321   : > { %v951_v30 = vsel %vm950_vm4, %v948_v29, -inf }
 0x322   : > { %952 = vmax.xlane.f32.xlu1 %v951_v30 }
 0x324   : > { %v940_v31 = vpop.f32.mrb[4].mxu1 }
 0x325   : > { %v947_v32 = vmul.f32 0.25, %v940_v31  ;;  %v2886_v33 = vpop.f32.mrb[5].mxu1 }
 0x326   : > { %v943_v34 = vpop.f32.mrb[6].mxu1 }
 0x327   : > { %v2887_v35 = vpop.f32.mrb[7].mxu1  ;;  %v949_v36 = vadd.f32 %v947_v32, %v3517_v24  ;;  %v3127_v32 = vld [vmem:[%s3932_s10] sm:$0xff]  }
 0x329   : > { %v954_v37 = vsel %vm950_vm4, %v949_v36, -inf }
 0x32a   : > { %955 = vmax.xlane.f32.xlu1 %v954_v37  ;;  %v1201_v37 = vsub.s32 3, %v3417_v16 }
 0x3af   : > { %v953_v38 = vpop.xlane.xlu1 %952 }
 0x3b0   : > { %v957_v39 = vsub.f32 %v948_v29, %v953_v38 }
 0x3b2   : > { %v959_v40 = vmul.f32 1.442695, %v957_v39 }
 0x3b4   : > { %3171 = vpow2.f32 %v959_v40 }
 0x3b7   : > { %v956_v41 = vpop.xlane.xlu1 %955 }
 0x3b8   : > { %v958_v42 = vsub.f32 %v949_v36, %v956_v41  ;;  %v1196_v36 = vsub.s32 2, %v3417_v16  ;;  %v1202_v41 = vrot.slane %v3423_v18, %v1201_v37 }
 0x3ba   : > { %v961_v43 = vmul.f32 1.442695, %v958_v42  ;;  %v1197_v38 = vrot.slane %v3423_v18, %v1196_v36 }
 0x3bc   : > { %3173 = vpow2.f32 %v961_v43 }
 0x3be   : > { %v3172_v44 = vpop.eup %3171 }
 0x3bf   : > { %v963_v45 = vsel %vm950_vm4, %v3172_v44, 0.0 }
 0x3c0   : > { %964 = vadd.xlane.f32.xlu0 %v963_v45  ;;  %v3129_v45 = vld [vmem:[%s3934_s12] sm:$0xff]  }
 0x3c6   : > { %v3174_v46 = vpop.eup %3173 }
 0x3c7   : > { %v966_v47 = vsel %vm950_vm4, %v3174_v46, 0.0 }
 0x3c8   : > { %967 = vadd.xlane.f32.xlu1 %v966_v47  ;;  %v3131_v47 = vld [vmem:[%s3934_s12 + $0x10] sm:$0xff]  }
 0x44d   : > { %v965_v48 = vpop.xlane.xlu0 %964 }
 0x44e   : > { %3175 = vrcp.f32 %v965_v48  ;;  %v3132_v48 = vld [vmem:[%s3934_s12 + $0x18] sm:$0xff]  }
 0x455   : > { %v968_v49 = vpop.xlane.xlu1 %967 }
 0x456   : > { %3177 = vrcp.f32 %v968_v49  ;;  %v3133_v49 = vld [vmem:[%s3934_s12 + $0x20] sm:$0xff]  }
 0x458   : > { %v3176_v50 = vpop.eup %3175 }
 0x459   : > { %v971_v51 = vmul.f32 %v3176_v50, %v3172_v44  ;;  %v3134_v50 = vld [vmem:[%s3934_s12 + $0x28] sm:$0xff]  }
 0x45b   : > { %v973_v52 = vpack.c.bf16 %v971_v51, %v971_v51  ;;  %v3135_v51 = vld [vmem:[%s3934_s12 + $0x30] sm:$0xff]  }
 0x45d   : > { %2891 = vmatmul.mubr.msk.bf16.vlgmr.msra.gmra.mrb[24].mxu0 %vm950_vm4, %v973_v52  ;;  %v3136_v52 = vld [vmem:[%s3934_s12 + $0x38] sm:$0xff]  }
 0x45e   : > { %2902 = vmatprep.mubr.msk.bf16.mxu0 %vm3264_vm1, %v3263_v9  ;;  %2901 = vmatpush3.bf16.msra.mxu0 %v3125_v56 }
 0x45f   : > { %2912 = vmatprep.subr.bf16.mxu0 %v3263_v9 }
 0x460   : > { %v3178_v53 = vpop.eup %3177 }
 0x461   : > { %v972_v54 = vmul.f32 %v3178_v53, %v3174_v46  ;;  %v3130_v46 = vld [vmem:[%s3934_s12 + $0x8] sm:$0xff]   ;;  %v2608_v53 = vld [vmem:[%s3933_s11] ss:$0 sm:$0xff] }
 0x463   : > { %v974_v55 = vpack.c.bf16 %v972_v54, %v972_v54 }
 0x465   : > { %2897 = vmatmul.mubr.msk.bf16.vlgmr.msra.gmra.mrb[8].mxu1 %vm950_vm4, %v974_v55 }
 0x466   : > { %2908 = vmatprep.mubr.msk.bf16.mxu1 %vm3264_vm1, %v3263_v9  ;;  %2907 = vmatpush3.bf16.msra.mxu1 %v3126_v57 }
 0x467   : > { %2920 = vmatprep.subr.bf16.mxu1 %v3263_v9 }
 0x530   : > { %v1016_v58 = vpop.f32.mrb[24].mxu0 }
 0x531   : > { %v1068_v59 = vpack.c.bf16 %v1016_v58, %v1016_v58  ;;  %v2892_v60 = vpop.f32.mrb[25].mxu0 }
 0x532   : > { %v1019_v61 = vpop.f32.mrb[26].mxu0 }
 0x533   : > { %v2893_v62 = vpop.f32.mrb[27].mxu0  ;;  %2903 = vmatmul.mubr.msk.bf16.vlgmr.msra.gmra.mrb[28].mxu0 %vm853_vm2, %v1068_v59 }
 0x534   : > { %2916 = vmatprep.mubr.msk.bf16.mxu0 %vm3264_vm1, %v3263_v9  ;;  %2913 = vmatpush3.bf16.msra.mxu0 %v3127_v32 }
 0x535   : > { %2914 = vmatprep.subr.bf16.mxu0 %v3263_v9 }
 0x538   : > { %v1062_v63 = vpop.f32.mrb[8].mxu1 }
 0x539   : > { %v1069_v1 = vpack.c.bf16 %v1062_v63, %v1062_v63  ;;  %v2898_v2 = vpop.f32.mrb[9].mxu1 }
 0x53a   : > { %v1065_v3 = vpop.f32.mrb[10].mxu1 }
 0x53b   : > { %v2899_v4 = vpop.f32.mrb[11].mxu1  ;;  %2909 = vmatmul.mubr.msk.bf16.vlgmr.msra.gmra.mrb[12].mxu1 %vm853_vm2, %v1069_v1 }
 0x53c   : > { %2936 = vmatprep.mubr.msk.bf16.mxu1 %vm3264_vm1, %v3263_v9  ;;  %2921 = vmatpush3.bf16.msra.mxu1 %v3129_v45  ;;  %v3146_v45 = vld [vmem:[%s3928_s6 + $0x38] sm:$0xff]  }
 0x53d   : > { %2922 = vmatprep.subr.bf16.mxu1 %v3263_v9 }
 0x540   : > { %2923 = vmatpush3.bf16.msra.mxu1 %v3130_v46  ;;  %v3147_v46 = vld [vmem:[%s3929_s7 + $0x30] sm:$0xff]  }
 0x541   : > { %2924 = vmatprep.subr.bf16.mxu1 %v3263_v9 }
 0x544   : > { %2925 = vmatpush3.bf16.msra.mxu1 %v3131_v47  ;;  %v3148_v47 = vld [vmem:[%s3929_s7 + $0x38] sm:$0xff]  }
 0x545   : > { %2926 = vmatprep.subr.bf16.mxu1 %v3263_v9 }
 0x548   : > { %2927 = vmatpush3.bf16.msra.mxu1 %v3132_v48 }
 0x549   : > { %2928 = vmatprep.subr.bf16.mxu1 %v3263_v9 }
 0x54c   : > { %2929 = vmatpush3.bf16.msra.mxu1 %v3133_v49 }
 0x54d   : > { %2930 = vmatprep.subr.bf16.mxu1 %v3263_v9 }
 0x550   : > { %2931 = vmatpush3.bf16.msra.mxu1 %v3134_v50 }
 0x551   : > { %2932 = vmatprep.subr.bf16.mxu1 %v3263_v9 }
 0x554   : > { %2933 = vmatpush3.bf16.msra.mxu1 %v3135_v51 }
 0x555   : > { %2934 = vmatprep.subr.bf16.mxu1 %v3263_v9 }
 0x558   : > { %2935 = vmatpush3.bf16.msra.mxu1 %v3136_v52 }
 0x559   : > { %2972 = vmatprep.subr.bf16.mxu1 %v3263_v9 }
 0x606   : > { %v1117_v5 = vpop.f32.mrb[28].mxu0 }
 0x607   : > { %v2904_v6 = vpop.f32.mrb[29].mxu0  ;;  %v1172_v12 = vsel %vm446_vm0, %v1117_v5, 0.0 }
 0x608   : > { %v1120_v7 = vpop.f32.mrb[30].mxu0  ;;  %v1388_v6 = vsub.s32 5, %v3417_v16  ;;  %v3162_v16 = vld [vmem:[%s3943_s2 + $0x8] sm:$0xff]  }
 0x609   : > { %v2905_v8 = vpop.f32.mrb[31].mxu0 }
 0x60a   : > { %v1389_v7 = vrot.slane %v3423_v18, %v1388_v6  ;;  %v3137_v18 = vld [vmem:[%s3927_s5 + $0x20] sm:$0xff]  }
 0x60e   : > { %v1166_v11 = vpop.f32.mrb[12].mxu1 }
 0x60f   : > { %v1173_v13 = vsel %vm446_vm0, %v1166_v11, 0.0  ;;  %v2910_v14 = vpop.f32.mrb[13].mxu1 }
 0x610   : > { %v1174_v15 = vadd.f32 %v1173_v13, %v1172_v12  ;;  %v1169_v20 = vpop.f32.mrb[14].mxu1 }
 0x611   : > { %v2911_v22 = vpop.f32.mrb[15].mxu1 }
 0x612   : > { %v1175_v23 = vadd.f32 %v1174_v15, %v3389_v0  ;;  %v3128_v0 = vld [vmem:[%s3932_s10 + $0x8] sm:$0xff]  }
 0x613   : > { %2915 = vmatpush3.bf16.msra.mxu0 %v3128_v0  ;;  %v3644_v0 = vld [vmem:[%s3926_s4 + $0x8] sm:$0x3f] }
 0x614   : > { %v3552_v25 = vadd.f32 %v1179_v21, %v1175_v23  ;;  %2940 = vmatprep.subr.bf16.mxu0 %v3263_v9 }
 0x616   : > { %v1181_v26 = vsel %vm446_vm0, %v3552_v25, 0.0 }
 0x617   : > { %1182 = vadd.xlane.f32.xlu0 %v1181_v26 }
 0x6a4   : > { %v1183_v27 = vpop.xlane.xlu0 %1182 }
 0x6a5   : > { %v1184_v28 = vmul.f32 0.03125, %v1183_v27 }
 0x6a7   : > { %v1185_v29 = vsub.f32 %v3552_v25, %v1184_v28  ;;  %v3139_v28 = vld [vmem:[%s3927_s5 + $0x28] sm:$0xff]  }
 0x6a9   : > { %v1186_v30 = vmul.f32 %v1185_v29, %v1185_v29 }
 0x6ab   : > { %v1187_v31 = vsel %vm446_vm0, %v1186_v30, 0.0 }
 0x6ac   : > { %1188 = vadd.xlane.f32.xlu1 %v1187_v31 }
 0x739   : > { %v1189_v33 = vpop.xlane.xlu1 %1188 }
 0x73a   : > { %v1190_v34 = vmul.f32 0.03125, %v1189_v33  ;;  %v1416_v33 = vrot.slane %v3644_v0, %v463_v17  ;;  %v3142_v17 = vld [vmem:[%s3927_s5 + $0x38] sm:$0xff]  }
 0x73c   : > { %v1191_v35 = vadd.f32 1e-05, %v1190_v34 }
 0x73e   : > { %3179 = vrsqrt.f32 %v1191_v35  ;;  %v1421_v35 = vrot.slane %v3644_v0, %v468_v19  ;;  %v3143_v19 = vld [vmem:[%s3928_s6 + $0x20] sm:$0xff]  }
 0x748   : > { %v3180_v39 = vpop.eup %3179 }
 0x749   : > { %v1193_v40 = vmul.f32 %v3180_v39, %v1185_v29  ;;  %v3140_v29 = vld [vmem:[%s3929_s7 + $0x28] sm:$0xff]  }
 0x74b   : > { %v1198_v42 = vmul.f32 %v1197_v38, %v1193_v40 }
 0x74d   : > { %v1203_v43 = vadd.f32 %v1202_v41, %v1198_v42  ;;  %v3141_v41 = vld [vmem:[%s3927_s5 + $0x30] sm:$0xff]  }
 0x74f   : > { %v1204_v44 = vpack.c.bf16 %v1203_v43, %v1203_v43  ;;  %v3144_v43 = vld [vmem:[%s3928_s6 + $0x28] sm:$0xff]  }
 0x751   : > { %2917 = vmatmul.mubr.msk.bf16.vlgmr.msra.gmra.mrb[32].mxu0 %vm446_vm0, %v1204_v44  ;;  %v3145_v44 = vld [vmem:[%s3928_s6 + $0x30] sm:$0xff]  }
 0x752   : > { %2944 = vmatprep.mubr.msk.bf16.mxu0 %vm3264_vm1, %v3263_v9  ;;  %2941 = vmatpush3.bf16.msra.mxu0 %v3137_v18  ;;  %v2636_v18 = vld [vmem:[%s3930_s8 + $0x7] ss:$0 sm:$0xff] }
 0x753   : > { %2942 = vmatprep.subr.bf16.mxu0 %v3263_v9 }
 0x756   : > { %2943 = vmatpush3.bf16.msra.mxu0 %v3139_v28 }
 0x757   : > { %2948 = vmatprep.subr.bf16.mxu0 %v3263_v9 }
 0x824   : > { %v1265_v54 = vpop.f32.mrb[32].mxu0 }
 0x825   : > { %v1266_v55 = vadd.f32 %v2608_v53, %v1265_v54  ;;  %v2918_v56 = vpop.f32.mrb[33].mxu0 }
 0x826   : > { %v1268_v57 = vpop.f32.mrb[34].mxu0 }
 0x827   : > { %v1271_v58 = vmul.f32 %v1266_v55, %v1266_v55  ;;  %v2919_v59 = vpop.f32.mrb[35].mxu0 }
 0x829   : > { %v1272_v60 = vmul.f32 %v1271_v58, %v1266_v55 }
 0x82b   : > { %v1273_v61 = vmul.f32 0.044715, %v1272_v60  ;;  %v2651_v60 = vld [vmem:[%s3930_s8 + $0x8] ss:$0 sm:$0xff] }
 0x82d   : > { %v1274_v62 = vadd.f32 %v1273_v61, %v1266_v55 }
 0x82f   : > { %v1275_v63 = vmul.f32 0.7978846, %v1274_v62 }
 0x831   : > { %3181 = vtanh.f32 %v1275_v63 }
 0x83b   : > { %v3182_v1 = vpop.eup %3181 }
 0x83c   : > { %v1277_v2 = vadd.f32 1.0, %v3182_v1  ;;  %v2667_v1 = vld [vmem:[%s3930_s8 + $0xa] ss:$0 sm:$0xff] }
 0x83e   : > { %v1278_v3 = vmul.f32 0.5, %v1277_v2 }
 0x840   : > { %v1279_v4 = vmul.f32 %v1278_v3, %v1266_v55 }
 0x842   : > { %v1280_v5 = vpack.c.bf16 %v1279_v4, %v1279_v4 }
 0x844   : > { %2937 = vmatmul.mubr.bf16.vlgmr.msra.gmra.mrb[16].mxu1 %v1280_v5  ;;  %v2635_v5 = vld [vmem:[%s3930_s8 + $0x6] ss:$0 sm:$0xff] }
 0x845   : > { %2976 = vmatprep.mubr.msk.bf16.mxu1 %vm3264_vm1, %v3263_v9 }
 0x917   : > { %v1379_v8 = vpop.f32.mrb[16].mxu1 }
 0x918   : > { %v1385_v11 = vadd.f32 %v1379_v8, %v3552_v25  ;;  %v2938_v12 = vpop.f32.mrb[17].mxu1  ;;  %v3138_v25 = vld [vmem:[%s3929_s7 + $0x20] sm:$0xff]  }
 0x919   : > { %v1382_v13 = vpop.f32.mrb[18].mxu1  ;;  %2973 = vmatpush3.bf16.msra.mxu1 %v3138_v25 }
 0x91a   : > { %v3619_v14 = vadd.f32 %v1389_v7, %v1385_v11  ;;  %v2939_v15 = vpop.f32.mrb[19].mxu1  ;;  %2974 = vmatprep.subr.bf16.mxu1 %v3263_v9  ;;  %v2652_v11 = vld [vmem:[%s3930_s8 + $0x9] ss:$0 sm:$0xff] }
 0x91c   : > { %v1400_v20 = vsel %vm446_vm0, %v3619_v14, 0.0 }
 0x91d   : > { %1401 = vadd.xlane.f32.xlu0 %v1400_v20  ;;  %2975 = vmatpush3.bf16.msra.mxu1 %v3140_v29  ;;  %v2668_v29 = vld [vmem:[%s3930_s8 + $0xb] ss:$0 sm:$0xff] }
 0x91e   : > { %2988 = vmatprep.subr.bf16.mxu1 %v3263_v9 }
 0x9aa   : > { %v1402_v21 = vpop.xlane.xlu0 %1401 }
 0x9ab   : > { %v1403_v22 = vmul.f32 0.03125, %v1402_v21 }
 0x9ad   : > { %v1404_v23 = vsub.f32 %v3619_v14, %v1403_v22 }
 0x9af   : > { %v1405_v26 = vmul.f32 %v1404_v23, %v1404_v23 }
 0x9b1   : > { %v1406_v27 = vsel %vm446_vm0, %v1405_v26, 0.0 }
 0x9b2   : > { %1407 = vadd.xlane.f32.xlu1 %v1406_v27 }
 0xa3f   : > { %v1408_v30 = vpop.xlane.xlu1 %1407 }
 0xa40   : > { %v1409_v31 = vmul.f32 0.03125, %v1408_v30 }
 0xa42   : > { %v1410_v32 = vadd.f32 1e-05, %v1409_v31 }
 0xa44   : > { %3183 = vrsqrt.f32 %v1410_v32 }
 0xa4e   : > { %v3184_v34 = vpop.eup %3183 }
 0xa4f   : > { %v1412_v38 = vmul.f32 %v3184_v34, %v1404_v23 }
 0xa51   : > { %v1417_v39 = vmul.f32 %v1416_v33, %v1412_v38 }
 0xa53   : > { %v1422_v40 = vadd.f32 %v1421_v35, %v1417_v39 }
 0xa55   : > { %v1423_v42 = vpack.c.bf16 %v1422_v40, %v1422_v40 }
 0xa57   : > { %2945 = vmatmul.mubr.msk.bf16.vlgmr.msra.gmra.mrb[36].mxu0 %vm446_vm0, %v1423_v42  ;;  %2977 = vmatmul.mubr.msk.bf16.vlgmr.msra.gmra.mrb[20].mxu1 %vm446_vm0, %v1423_v42 }
 0xa58   : > { %2949 = vmatpush3.bf16.msra.mxu0 %v3141_v41  ;;  %2952 = vmatprep.mubr.msk.bf16.mxu0 %vm3264_vm1, %v3263_v9 }
 0xa59   : > { %2950 = vmatprep.subr.bf16.mxu0 %v3263_v9  ;;  %2990 = vmatprep.mubr.msk.bf16.mxu1 %vm3264_vm1, %v3263_v9 }
 0xa5c   : > { %2951 = vmatpush3.bf16.msra.mxu0 %v3142_v17 }
 0xa5d   : > { %2956 = vmatprep.subr.bf16.mxu0 %v3263_v9 }
 0xa5f   : > { %2953 = vmatmul.mubr.msk.bf16.vlgmr.msra.gmra.mrb[40].mxu0 %vm446_vm0, %v1423_v42 }
 0xa60   : > { %2957 = vmatpush3.bf16.msra.mxu0 %v3143_v19  ;;  %2960 = vmatprep.mubr.msk.bf16.mxu0 %vm3264_vm1, %v3263_v9 }
 0xa61   : > { %2958 = vmatprep.subr.bf16.mxu0 %v3263_v9 }
 0xa64   : > { %2959 = vmatpush3.bf16.msra.mxu0 %v3144_v43 }
 0xa65   : > { %2964 = vmatprep.subr.bf16.mxu0 %v3263_v9 }
 0xa67   : > { %2961 = vmatmul.mubr.msk.bf16.vlgmr.msra.gmra.mrb[44].mxu0 %vm446_vm0, %v1423_v42 }
 0xa68   : > { %2965 = vmatpush3.bf16.msra.mxu0 %v3145_v44  ;;  %2968 = vmatprep.mubr.msk.bf16.mxu0 %vm3264_vm1, %v3263_v9 }
 0xa69   : > { %2966 = vmatprep.subr.bf16.mxu0 %v3263_v9 }
 0xa6c   : > { %2967 = vmatpush3.bf16.msra.mxu0 %v3146_v45 }
 0xa6d   : > { %2980 = vmatprep.subr.bf16.mxu0 %v3263_v9 }
 0xa6f   : > { %2969 = vmatmul.mubr.msk.bf16.vlgmr.msra.gmra.mrb[48].mxu0 %vm446_vm0, %v1423_v42 }
 0xa70   : > { %2981 = vmatpush3.bf16.msra.mxu0 %v3147_v46  ;;  %2984 = vmatprep.mubr.msk.bf16.mxu0 %vm3264_vm1, %v3263_v9 }
 0xa71   : > { %2982 = vmatprep.subr.bf16.mxu0 %v3263_v9 }
 0xa74   : > { %2983 = vmatpush3.bf16.msra.mxu0 %v3148_v47 }
 0xa75   : > { %2994 = vmatprep.subr.bf16.mxu0 %v3263_v9 }
 0xa77   : > { %2985 = vmatmul.mubr.msk.bf16.vlgmr.msra.gmra.mrb[52].mxu0 %vm446_vm0, %v1423_v42 }
 0xa78   : > { %2996 = vmatprep.mubr.msk.bf16.mxu0 %vm3264_vm1, %v3263_v9 }
 0xb2a   : > { %v1494_v48 = vpop.f32.mrb[36].mxu0  ;;  %v1748_v49 = vpop.f32.mrb[20].mxu1 }
 0xb2b   : > { %v2946_v50 = vpop.f32.mrb[37].mxu0  ;;  %v2978_v51 = vpop.f32.mrb[21].mxu1  ;;  %v1749_v7 = vadd.f32 %v2667_v1, %v1748_v49  ;;  %v1495_v12 = vadd.f32 %v2635_v5, %v1494_v48 }
 0xb2c   : > { %v1497_v52 = vpop.f32.mrb[38].mxu0  ;;  %v1751_v53 = vpop.f32.mrb[22].mxu1 }
 0xb2d   : > { %v2947_v54 = vpop.f32.mrb[39].mxu0  ;;  %v2979_v55 = vpop.f32.mrb[23].mxu1  ;;  %v1806_v15 = vpack.c.bf16 %v1749_v7, %v1749_v7  ;;  %v1552_v23 = vpack.c.bf16 %v1495_v12, %v1495_v12 }
 0xb2f   : > { %v1932_v25 = vsel %vm978_vm3, %v1806_v15, 0 }
 0xb32   : > { %v1546_v56 = vpop.f32.mrb[40].mxu0 }
 0xb33   : > { %v2954_v57 = vpop.f32.mrb[41].mxu0  ;;  %v1547_v30 = vadd.f32 %v2636_v18, %v1546_v56 }
 0xb34   : > { %v1549_v58 = vpop.f32.mrb[42].mxu0 }
 0xb35   : > { %v2955_v59 = vpop.f32.mrb[43].mxu0  ;;  %v1553_v35 = vpack.c.bf16 %v1547_v30, %v1547_v30 }
 0xb3a   : > { %v1621_v61 = vpop.f32.mrb[44].mxu0 }
 0xb3b   : > { %v1622_v62 = vadd.f32 %v2651_v60, %v1621_v61  ;;  %v2962_v63 = vpop.f32.mrb[45].mxu0 }
 0xb3c   : > { %v1624_v2 = vpop.f32.mrb[46].mxu0 }
 0xb3d   : > { %v1679_v3 = vpack.c.bf16 %v1622_v62, %v1622_v62  ;;  %v2963_v4 = vpop.f32.mrb[47].mxu0 }
 0xb3f   : > { %v1812_v8 = vsel %vm853_vm2, %v1679_v3, 0 }
 0xb40   : > { %2989 = vmatpush3.bf16.xpose.msra.mxu1 %v1812_v8  ;;  %v3149_v8 = vld [vmem:[%s3931_s9 + $0x10] sm:$0xff]  }
 0xb41   : > { %3000 = vmatprep.subr.bf16.mxu1 %v3263_v9 }
 0xb42   : > { %v1673_v13 = vpop.f32.mrb[48].mxu0 }
 0xb43   : > { %v1674_v20 = vadd.f32 %v2652_v11, %v1673_v13  ;;  %v2970_v21 = vpop.f32.mrb[49].mxu0  ;;  %v3150_v11 = vld [vmem:[%s3931_s9 + $0x18] sm:$0xff]  }
 0xb44   : > { %v1676_v22 = vpop.f32.mrb[50].mxu0 }
 0xb45   : > { %v1680_v26 = vpack.c.bf16 %v1674_v20, %v1674_v20  ;;  %v2971_v27 = vpop.f32.mrb[51].mxu0 }
 0xb47   : > { %v1858_v28 = vsel %vm853_vm2, %v1680_v26, 0  ;;  %2991 = vmatmul.mubr.msk.bf16.vlgmr.msra.gmra.mrb[24].mxu1 %vm853_vm2, %v1552_v23 }
 0xb48   : > { %2995 = vmatpush3.bf16.xpose.msra.mxu0 %v1858_v28  ;;  %3001 = vmatpush3.bf16.msra.mxu1 %v1932_v25 }
 0xb49   : > { %3006 = vmatprep.subr.bf16.mxu0 %v3263_v9  ;;  %3002 = vmatprep.mubr.msk.bf16.mxu1 %vm3264_vm1, %v3263_v9 }
 0xb4a   : > { %v1800_v31 = vpop.f32.mrb[52].mxu0  ;;  %3012 = vmatprep.subr.bf16.mxu1 %v3263_v9 }
 0xb4b   : > { %v1801_v32 = vadd.f32 %v2668_v29, %v1800_v31  ;;  %v2986_v33 = vpop.f32.mrb[53].mxu0 }
 0xb4c   : > { %v1803_v34 = vpop.f32.mrb[54].mxu0 }
 0xb4d   : > { %v1807_v38 = vpack.c.bf16 %v1801_v32, %v1801_v32  ;;  %v2987_v39 = vpop.f32.mrb[55].mxu0 }
 0xb4e   : > { %v2132_v39 = vrot.slane %v3644_v0, %v1178_v10  ;;  %v3151_v10 = vld [vmem:[%s3932_s10 + $0x10] sm:$0xff]  }
 0xb4f   : > { %v1978_v40 = vsel %vm978_vm3, %v1807_v38, 0  ;;  %2997 = vmatmul.mubr.msk.bf16.vlgmr.msra.gmra.mrb[56].mxu0 %vm853_vm2, %v1553_v35 }
 0xb50   : > { %3007 = vmatpush3.bf16.msra.mxu0 %v1978_v40  ;;  %3008 = vmatprep.mubr.msk.bf16.mxu0 %vm3264_vm1, %v3263_v9 }
 0xb51   : > { %3018 = vmatprep.subr.bf16.mxu0 %v3263_v9 }
 0xc1a   : > { %v1848_v41 = vpop.f32.mrb[24].mxu1 }
 0xc1b   : > { %v1900_v42 = vmul.f32 0.25, %v1848_v41  ;;  %v2992_v17 = vpop.f32.mrb[25].mxu1 }
 0xc1c   : > { %v1851_v19 = vpop.f32.mrb[26].mxu1 }
 0xc1d   : > { %v2993_v43 = vpop.f32.mrb[27].mxu1  ;;  %v1902_v44 = vadd.f32 %v1900_v42, %v3517_v24 }
 0xc1f   : > { %v1904_v45 = vsel %vm950_vm4, %v1902_v44, -inf }
 0xc20   : > { %1905 = vmax.xlane.f32.xlu0 %v1904_v45 }
 0xc22   : > { %v1894_v46 = vpop.f32.mrb[56].mxu0 }
 0xc23   : > { %v1901_v47 = vmul.f32 0.25, %v1894_v46  ;;  %v2998_v48 = vpop.f32.mrb[57].mxu0 }
 0xc24   : > { %v1897_v49 = vpop.f32.mrb[58].mxu0 }
 0xc25   : > { %v2999_v50 = vpop.f32.mrb[59].mxu0  ;;  %v1903_v51 = vadd.f32 %v1901_v47, %v3517_v24 }
 0xc26   : > { %v2150_v50 = vrot.slane %v3644_v0, %v1196_v36  ;;  %v3154_v36 = vld [vmem:[%s3934_s12 + $0x48] sm:$0xff]  }
 0xc27   : > { %v1907_v52 = vsel %vm950_vm4, %v1903_v51, -inf }
 0xc28   : > { %1908 = vmax.xlane.f32.xlu1 %v1907_v52 }
 0xcad   : > { %v1906_v53 = vpop.xlane.xlu0 %1905 }
 0xcae   : > { %v1910_v54 = vsub.f32 %v1902_v44, %v1906_v53  ;;  %v2155_v53 = vrot.slane %v3644_v0, %v1201_v37  ;;  %v3155_v37 = vld [vmem:[%s3934_s12 + $0x50] sm:$0xff]  }
 0xcb0   : > { %v1912_v55 = vmul.f32 1.442695, %v1910_v54 }
 0xcb2   : > { %3185 = vpow2.f32 %v1912_v55 }
 0xcb5   : > { %v1909_v56 = vpop.xlane.xlu1 %1908 }
 0xcb6   : > { %v1911_v57 = vsub.f32 %v1903_v51, %v1909_v56 }
 0xcb8   : > { %v1914_v58 = vmul.f32 1.442695, %v1911_v57  ;;  %v3153_v57 = vld [vmem:[%s3934_s12 + $0x40] sm:$0xff]  }
 0xcba   : > { %3187 = vpow2.f32 %v1914_v58  ;;  %v3156_v58 = vld [vmem:[%s3934_s12 + $0x58] sm:$0xff]  }
 0xcbc   : > { %v3186_v59 = vpop.eup %3185 }
 0xcbd   : > { %v1916_v60 = vsel %vm950_vm4, %v3186_v59, 0.0 }
 0xcbe   : > { %1917 = vadd.xlane.f32.xlu0 %v1916_v60  ;;  %v3158_v60 = vld [vmem:[%s3934_s12 + $0x68] sm:$0xff]  }
 0xcc4   : > { %v3188_v61 = vpop.eup %3187 }
 0xcc5   : > { %v1919_v62 = vsel %vm950_vm4, %v3188_v61, 0.0 }
 0xcc6   : > { %1920 = vadd.xlane.f32.xlu1 %v1919_v62  ;;  %v3160_v62 = vld [vmem:[%s3934_s12 + $0x78] sm:$0xff]  }
 0xd4b   : > { %v1918_v24 = vpop.xlane.xlu0 %1917 }
 0xd4c   : > { %3189 = vrcp.f32 %v1918_v24  ;;  %v2692_v24 = vld [vmem:[%s3933_s11 + $0x1] ss:$0 sm:$0xff] }
 0xd53   : > { %v1921_v63 = vpop.xlane.xlu1 %1920 }
 0xd54   : > { %3191 = vrcp.f32 %v1921_v63 }
 0xd56   : > { %v3190_v1 = vpop.eup %3189 }
 0xd57   : > { %v1924_v2 = vmul.f32 %v3190_v1, %v3186_v59  ;;  %v3157_v59 = vld [vmem:[%s3934_s12 + $0x60] sm:$0xff]  }
 0xd59   : > { %v1926_v3 = vpack.c.bf16 %v1924_v2, %v1924_v2 }
 0xd5b   : > { %3003 = vmatmul.mubr.msk.bf16.vlgmr.msra.gmra.mrb[28].mxu1 %vm950_vm4, %v1926_v3 }
 0xd5c   : > { %3014 = vmatprep.mubr.msk.bf16.mxu1 %vm3264_vm1, %v3263_v9  ;;  %3013 = vmatpush3.bf16.msra.mxu1 %v3149_v8 }
 0xd5d   : > { %3024 = vmatprep.subr.bf16.mxu1 %v3263_v9 }
 0xd5e   : > { %v3192_v4 = vpop.eup %3191 }
 0xd5f   : > { %v1925_v5 = vmul.f32 %v3192_v4, %v3188_v61  ;;  %v3159_v61 = vld [vmem:[%s3934_s12 + $0x70] sm:$0xff]  }
 0xd61   : > { %v1927_v7 = vpack.c.bf16 %v1925_v5, %v1925_v5 }
 0xd63   : > { %3009 = vmatmul.mubr.msk.bf16.vlgmr.msra.gmra.mrb[60].mxu0 %vm950_vm4, %v1927_v7 }
 0xd64   : > { %3020 = vmatprep.mubr.msk.bf16.mxu0 %vm3264_vm1, %v3263_v9  ;;  %3019 = vmatpush3.bf16.msra.mxu0 %v3150_v11 }
 0xd65   : > { %3032 = vmatprep.subr.bf16.mxu0 %v3263_v9 }
 0xe2e   : > { %v1968_v12 = vpop.f32.mrb[28].mxu1 }
 0xe2f   : > { %v2020_v13 = vpack.c.bf16 %v1968_v12, %v1968_v12  ;;  %v3004_v15 = vpop.f32.mrb[29].mxu1 }
 0xe30   : > { %v1971_v20 = vpop.f32.mrb[30].mxu1 }
 0xe31   : > { %v3005_v21 = vpop.f32.mrb[31].mxu1  ;;  %3015 = vmatmul.mubr.msk.bf16.vlgmr.msra.gmra.mrb[32].mxu1 %vm853_vm2, %v2020_v13 }
 0xe32   : > { %3028 = vmatprep.mubr.msk.bf16.mxu1 %vm3264_vm1, %v3263_v9  ;;  %3025 = vmatpush3.bf16.msra.mxu1 %v3151_v10  ;;  %v3168_v10 = vld [vmem:[%s3943_s2 + $0x38] sm:$0xff]  }
 0xe33   : > { %3026 = vmatprep.subr.bf16.mxu1 %v3263_v9 }
 0xe36   : > { %v2014_v22 = vpop.f32.mrb[60].mxu0 }
 0xe37   : > { %v2021_v23 = vpack.c.bf16 %v2014_v22, %v2014_v22  ;;  %v3010_v26 = vpop.f32.mrb[61].mxu0 }
 0xe38   : > { %v2017_v27 = vpop.f32.mrb[62].mxu0 }
 0xe39   : > { %v3011_v18 = vpop.f32.mrb[63].mxu0  ;;  %3021 = vmatmul.mubr.msk.bf16.vlgmr.msra.gmra.mrb[64].mxu0 %vm853_vm2, %v2021_v23  ;;  %v2345_v23 = vrot.slane %v3644_v0, %v1388_v6  ;;  %v2436_v6 = vsel %vm446_vm0, %v3162_v16, 0  ;;  %v3163_v0 = vld [vmem:[%s3943_s2 + $0x10] sm:$0xff]  }
 0xe3a   : > { %3048 = vmatprep.mubr.msk.bf16.mxu0 %vm3264_vm1, %v3263_v9  ;;  %3033 = vmatpush3.bf16.msra.mxu0 %v3153_v57 }
 0xe3b   : > { %3034 = vmatprep.subr.bf16.mxu0 %v3263_v9 }
 0xe3e   : > { %3035 = vmatpush3.bf16.msra.mxu0 %v3154_v36 }
 0xe3f   : > { %3036 = vmatprep.subr.bf16.mxu0 %v3263_v9 }
 0xe42   : > { %3037 = vmatpush3.bf16.msra.mxu0 %v3155_v37 }
 0xe43   : > { %3038 = vmatprep.subr.bf16.mxu0 %v3263_v9 }
 0xe46   : > { %3039 = vmatpush3.bf16.msra.mxu0 %v3156_v58 }
 0xe47   : > { %3040 = vmatprep.subr.bf16.mxu0 %v3263_v9 }
 0xe4a   : > { %3041 = vmatpush3.bf16.msra.mxu0 %v3157_v59 }
 0xe4b   : > { %3042 = vmatprep.subr.bf16.mxu0 %v3263_v9 }
 0xe4e   : > { %3043 = vmatpush3.bf16.msra.mxu0 %v3158_v60 }
 0xe4f   : > { %3044 = vmatprep.subr.bf16.mxu0 %v3263_v9 }
 0xe52   : > { %3045 = vmatpush3.bf16.msra.mxu0 %v3159_v61 }
 0xe53   : > { %3046 = vmatprep.subr.bf16.mxu0 %v3263_v9 }
 0xe56   : > { %3047 = vmatpush3.bf16.msra.mxu0 %v3160_v62 }
 0xf04   : > { %v2070_v25 = vpop.f32.mrb[32].mxu1 }
 0xf05   : > { %v3016_v28 = vpop.f32.mrb[33].mxu1  ;;  %v2125_v32 = vsel %vm446_vm0, %v2070_v25, 0.0 }
 0xf06   : > { %v2073_v29 = vpop.f32.mrb[34].mxu1 }
 0xf07   : > { %v3017_v30 = vpop.f32.mrb[35].mxu1 }
 0xf0c   : > { %v2119_v31 = vpop.f32.mrb[64].mxu0 }
 0xf0d   : > { %v2126_v33 = vsel %vm446_vm0, %v2119_v31, 0.0  ;;  %v3022_v34 = vpop.f32.mrb[65].mxu0  ;;  %v3161_v31 = vld [vmem:[%s3943_s2] sm:$0xff]  }
 0xf0e   : > { %v2127_v35 = vadd.f32 %v2126_v33, %v2125_v32  ;;  %v2122_v38 = vpop.f32.mrb[66].mxu0  ;;  %v2433_v32 = vsel %vm446_vm0, %v3161_v31, 0  ;;  %v2439_v33 = vsel %vm446_vm0, %v3163_v0, 0  ;;  %v3164_v34 = vld [vmem:[%s3943_s2 + $0x18] sm:$0xff]  }
 0xf0f   : > { %v3023_v40 = vpop.f32.mrb[67].mxu0  ;;  %v3165_v38 = vld [vmem:[%s3943_s2 + $0x20] sm:$0xff]  }
 0xf10   : > { %v2128_v41 = vadd.f32 %v2127_v35, %v3619_v14  ;;  %v3152_v14 = vld [vmem:[%s3932_s10 + $0x18] sm:$0xff]   ;;  %v2442_v35 = vsel %vm446_vm0, %v3164_v34, 0 }
 0xf11   : > { %3027 = vmatpush3.bf16.msra.mxu1 %v3152_v14  ;;  %v2454_v14 = vsel %vm446_vm0, %v3168_v10, 0 }
 0xf12   : > { %v3766_v42 = vadd.f32 %v2132_v39, %v2128_v41  ;;  %3052 = vmatprep.subr.bf16.mxu1 %v3263_v9  ;;  %v2445_v39 = vsel %vm446_vm0, %v3165_v38, 0 }
 0xf14   : > { %v2134_v17 = vsel %vm446_vm0, %v3766_v42, 0.0 }
 0xf15   : > { %2135 = vadd.xlane.f32.xlu0 %v2134_v17 }
 0xfa2   : > { %v2136_v19 = vpop.xlane.xlu0 %2135 }
 0xfa3   : > { %v2137_v43 = vmul.f32 0.03125, %v2136_v19 }
 0xfa5   : > { %v2138_v44 = vsub.f32 %v3766_v42, %v2137_v43  ;;  %v3166_v43 = vld [vmem:[%s3943_s2 + $0x28] sm:$0xff]  }
 0xfa7   : > { %v2139_v45 = vmul.f32 %v2138_v44, %v2138_v44 }
 0xfa9   : > { %v2140_v46 = vsel %vm446_vm0, %v2139_v45, 0.0  ;;  %v3167_v45 = vld [vmem:[%s3943_s2 + $0x30] sm:$0xff]   ;;  %s3205_s2 = scalar_lea.vmem %s3204_s24, 256 }
 0xfaa   : > { %2141 = vadd.xlane.f32.xlu1 %v2140_v46  ;;  %v2451_v46 = vsel %vm446_vm0, %v3167_v45, 0  ;;  %p3207_p1 = scmp.lt.s32.totalorder %s3205_s2, %s3199_s1 }
 0xfac   : > { %p3208_p2 = por %p3207_p1, %p3206_p0 }
 0xfae   : > { %p3209_p3 = pnand %p3208_p2, %p3202_p13 }
0x1037   : > { %v2142_v47 = vpop.xlane.xlu1 %2141 }
0x1038   : > { %v2143_v48 = vmul.f32 0.03125, %v2142_v47 }
0x103a   : > { %v2144_v49 = vadd.f32 1e-05, %v2143_v48 }
0x103c   : > { %3193 = vrsqrt.f32 %v2144_v49 }
0x1046   : > { %v3194_v51 = vpop.eup %3193 }
0x1047   : > { %v2146_v52 = vmul.f32 %v3194_v51, %v2138_v44  ;;  %v2448_v44 = vsel %vm446_vm0, %v3166_v43, 0  ;;  %v2720_v51 = vld [vmem:[%s3925_s3] ss:$0 sm:$0xff] }
0x1049   : > { %v2151_v54 = vmul.f32 %v2150_v50, %v2146_v52 }
0x104b   : > { %v2156_v55 = vadd.f32 %v2155_v53, %v2151_v54 }
0x104d   : > { %v2157_v56 = vpack.c.bf16 %v2156_v55, %v2156_v55 }
0x104f   : > { %3029 = vmatmul.mubr.msk.bf16.vlgmr.msra.gmra.mrb[36].mxu1 %vm446_vm0, %v2157_v56 }
0x1050   : > { %3068 = vmatprep.mubr.msk.bf16.mxu1 %vm3264_vm1, %v3263_v9  ;;  %3053 = vmatpush3.bf16.xpose.msra.mxu1 %v2433_v32 }
0x1051   : > { %3054 = vmatprep.subr.bf16.mxu1 %v3263_v9 }
0x1058   : > { %3055 = vmatpush3.bf16.xpose.msra.mxu1 %v2436_v6 }
0x1059   : > { %3056 = vmatprep.subr.bf16.mxu1 %v3263_v9 }
0x1060   : > { %3057 = vmatpush3.bf16.xpose.msra.mxu1 %v2439_v33 }
0x1061   : > { %3058 = vmatprep.subr.bf16.mxu1 %v3263_v9 }
0x1068   : > { %3059 = vmatpush3.bf16.xpose.msra.mxu1 %v2442_v35 }
0x1069   : > { %3060 = vmatprep.subr.bf16.mxu1 %v3263_v9 }
0x1070   : > { %3061 = vmatpush3.bf16.xpose.msra.mxu1 %v2445_v39 }
0x1071   : > { %3062 = vmatprep.subr.bf16.mxu1 %v3263_v9 }
0x1078   : > { %3063 = vmatpush3.bf16.xpose.msra.mxu1 %v2448_v44 }
0x1079   : > { %3064 = vmatprep.subr.bf16.mxu1 %v3263_v9 }
0x1080   : > { %3065 = vmatpush3.bf16.xpose.msra.mxu1 %v2451_v46 }
0x1081   : > { %3066 = vmatprep.subr.bf16.mxu1 %v3263_v9  ;;  %v2721_v9 = vld [vmem:[%s3925_s3 + $0x1] ss:$0 sm:$0xff] }
0x1088   : > { %3067 = vmatpush3.bf16.xpose.msra.mxu1 %v2454_v14 }
0x1122   : > { %v2220_v63 = vpop.f32.mrb[36].mxu1 }
0x1123   : > { %v2221_v1 = vadd.f32 %v2692_v24, %v2220_v63  ;;  %v3030_v2 = vpop.f32.mrb[37].mxu1 }
0x1124   : > { %v2223_v3 = vpop.f32.mrb[38].mxu1 }
0x1125   : > { %v2226_v4 = vmul.f32 %v2221_v1, %v2221_v1  ;;  %v3031_v5 = vpop.f32.mrb[39].mxu1 }
0x1127   : > { %v2227_v7 = vmul.f32 %v2226_v4, %v2221_v1 }
0x1129   : > { %v2228_v8 = vmul.f32 0.044715, %v2227_v7 }
0x112b   : > { %v2229_v11 = vadd.f32 %v2228_v8, %v2221_v1 }
0x112d   : > { %v2230_v12 = vmul.f32 0.7978846, %v2229_v11 }
0x112f   : > { %3195 = vtanh.f32 %v2230_v12 }
0x1139   : > { %v3196_v13 = vpop.eup %3195 }
0x113a   : > { %v2232_v15 = vadd.f32 1.0, %v3196_v13 }
0x113c   : > { %v2233_v20 = vmul.f32 0.5, %v2232_v15 }
0x113e   : > { %v2234_v21 = vmul.f32 %v2233_v20, %v2221_v1 }
0x1140   : > { %v2235_v22 = vpack.c.bf16 %v2234_v21, %v2234_v21 }
0x1142   : > { %3049 = vmatmul.mubr.bf16.vlgmr.msra.gmra.mrb[68].mxu0 %v2235_v22 }
0x1215   : > { %v2335_v26 = vpop.f32.mrb[68].mxu0 }
0x1216   : > { %v2341_v27 = vadd.f32 %v2335_v26, %v3766_v42  ;;  %v3050_v18 = vpop.f32.mrb[69].mxu0 }
0x1217   : > { %v2338_v25 = vpop.f32.mrb[70].mxu0 }
0x1218   : > { %v3051_v28 = vpop.f32.mrb[71].mxu0  ;;  %v2346_v29 = vadd.f32 %v2345_v23, %v2341_v27 }
0x121a   : > { %v2349_v30 = vsel %vm446_vm0, %v2346_v29, 0.0 }
0x121b   : > { %2350 = vadd.xlane.f32.xlu0 %v2349_v30 }
0x12a8   : > { %v2351_v40 = vpop.xlane.xlu0 %2350 }
0x12a9   : > { %v2352_v41 = vmul.f32 0.03125, %v2351_v40 }
0x12ab   : > { %v2353_v42 = vsub.f32 %v2346_v29, %v2352_v41 }
0x12ad   : > { %v2354_v17 = vmul.f32 %v2353_v42, %v2353_v42 }
0x12af   : > { %v2355_v19 = vsel %vm446_vm0, %v2354_v17, 0.0 }
0x12b0   : > { %2356 = vadd.xlane.f32.xlu1 %v2355_v19 }
0x133d   : > { %v2357_v47 = vpop.xlane.xlu1 %2356 }
0x133e   : > { %v2358_v48 = vmul.f32 0.03125, %v2357_v47 }
0x1340   : > { %v2359_v49 = vadd.f32 1e-05, %v2358_v48 }
0x1342   : > { %3197 = vrsqrt.f32 %v2359_v49 }
0x134c   : > { %v3198_v50 = vpop.eup %3197 }
0x134d   : > { %v2361_v52 = vmul.f32 %v3198_v50, %v2353_v42 }
0x134f   : > { %v2366_v53 = vmul.f32 %v2720_v51, %v2361_v52 }
0x1351   : > { %v2371_v54 = vadd.f32 %v2721_v9, %v2366_v53 }
0x1353   : > { %v2372_v55 = vpack.c.bf16 %v2371_v54, %v2371_v54 }
0x1355   : > { %3069 = vmatmul.mubr.msk.bf16.vlgmr.msra.gmra.mrb[40].mxu1 %vm446_vm0, %v2372_v55 }
0x1428   : > { %v2490_v56 = vpop.f32.mrb[40].mxu1 }
0x1429   : > { %2496 = vst [vmem:[%s431_s30] sm:$0xff] %v2490_v56  ;;  %v3070_v57 = vpop.f32.mrb[41].mxu1 }
0x142a   : > { %v2493_v36 = vpop.f32.mrb[42].mxu1 }
0x142b   : > { %3212 = shalt.err (!%p3209_p3)
}
0x142c   : > { %s3213_s0 = scalar_lea.hbm %s3882_s21, 128  ;;  %s3217_s16 = scalar_lea.hbm %s3935_s13, 256 }
0x142d   : > { %p3214_p4 = scmp.ne.s32.totalorder %s3882_s21, %s3213_s0  ;;  %p3218_p9 = scmp.lt.u32.totalorder %s3882_s21, %s3935_s13 }
0x142e   : > { %p3219_p10 = scmp.lt.u32.totalorder %s3217_s16, %s3213_s0  ;;  %p3221_p12 = scmp.lt.u32.totalorder %s3213_s0, %s3882_s21 }
0x142f   : > { %p3215_p7 = pnand %p3214_p4, %p3374_p5 }
0x1430   : > { %p3220_p11 = por %p3219_p10, %p3218_p9 }
0x1431   : > { %p3216_p8 = pneg %p3215_p7 }
0x1432   : > { %p3222_p13 = por %p3221_p12, %p3220_p11 }
0x1434   : > { %p3223_p0 = pnand %p3222_p13, %p3216_p8 }
0x1436   : > { %3226 = shalt.err (!%p3223_p0)
}
0x1437   : > { %3072 = dma.vmem_to_hbm [thread:$0]  (%p3374_p5), %s3877_s15, 128, %s3882_s21, %s2498_s22   ;;  %v3071_v37 = vpop.f32.mrb[43].mxu1 }
0x1438 PF: > { %p3078_p1 = scmp.ge.s32.totalorder %s3261_s28, 2  ;;  %s2523_s1 = sand.u32 1, %s3249_s25  }
0x1439   : > { %s2524_s2 = scalar_lea.sflag [#allocation3], %s2523_s1 }
0x143a   : > { %p3075_p2 = pnand %p3078_p1, %p3378_p6 }
0x143c   : > { %3244 = dma.done.wait (!%p3075_p2), %s2524_s2, 128  }
0x143d   : > { %3246 = vsyncadd (!%p3075_p2), %s2524_s2, 4294967168  ;;  %p23_p3 = scmp.ge.s32.totalorder %s3361_s14, 4   ;;  %s3944_s25 = smov %s3253_s26 }
0x143e   : > { %s3945_s26 = smov %s3257_s27  ;;  %s3946_s27 = smov %s3372_s17 }
0x143f   : > { %s3947_s28 = smov %s3361_s14  ;;  %25 = sbr.rel (!%p23_p3) target bundleno = 7 (0x7), region = 116 }
0x1446   :  { %2529 = vsyncpa [#allocation3], 1 }
0x1447   :  { %2531 = vsyncpa [#allocation3 + $0x1], 1 }

</bundles_post_ra>
